<compile_context>
chip_gen: v6e
topology: v6e:2x2x1
jax: 0.10.0
libtpu: 0.0.40
codegen_flags: <defaults>
</compile_context>

<pallas_src>
import functools

import jax
import jax.numpy as jnp
from jax.experimental import pallas as pl
from jax.experimental.pallas import tpu as pltpu


# ----------------------------------------------------------------------------
# One unidirectional LSTM layer over a time-major flattened batch block.
#   x_bf16   : (T*bb, Din) bf16 value, row t*bb + b = (timestep t, local batch b)
#   wi_ref   : (Din, 4H) bf16   torch gate order [i, f, g, o]
#   wh_ref   : (H, 4H)   f32
#   b_ref    : (1, 4H)   f32    (b_ih + b_hh)
#   gates_ref: (T*bb, 4H) f32 VMEM scratch (hoisted input projection)
#   seq_ref  : (T*bb, H)  f32 VMEM scratch (per-timestep hidden states)
# ----------------------------------------------------------------------------
def _lstm_layer(x_bf16, wi_ref, wh_ref, b_ref, gates_ref, seq_ref, T, bb):
    H = wh_ref.shape[0]
    # Hoisted input projection + bias: one bf16 MXU call for the whole block,
    # parked in VMEM so it never stays live in vregs across the time loop.
    gates_ref[...] = (
        jnp.dot(x_bf16, wi_ref[...], preferred_element_type=jnp.float32)
        + b_ref[...])
    wh = wh_ref[...]                                   # (H, 4H) f32, resident

    def step(t, carry):
        h, c = carry                                   # f32 (bb, H) each
        row = pl.multiple_of(t * bb, bb)
        g = gates_ref[pl.ds(row, bb), :] + jnp.dot(
            h, wh, preferred_element_type=jnp.float32)           # (bb, 4H)
        # Full-width transcendentals (EUP slot), aligned-friendly slices only
        # in the elementwise combine.  Torch gate order: [i, f, g, o].
        sg = jax.nn.sigmoid(g)
        tg = jnp.tanh(g)
        i_g = sg[:, 0 * H:1 * H]
        f_g = sg[:, 1 * H:2 * H]
        g_g = tg[:, 2 * H:3 * H]
        o_g = sg[:, 3 * H:4 * H]
        c = f_g * c + i_g * g_g
        h = o_g * jnp.tanh(c)
        seq_ref[pl.ds(row, bb), :] = h
        return h, c

    zeros = jnp.zeros((bb, H), jnp.float32)
    # TODO(synk): for very large T, cap the unroll factor instead of True.
    jax.lax.fori_loop(0, T, step, (zeros, zeros), unroll=True)


# ----------------------------------------------------------------------------
# Fused per-block forward: batch-norm -> 3 LSTM layers -> Linear(H3, 1).
# ----------------------------------------------------------------------------
def _fused_forward_kernel(T, bb,
                          x_ref, bn_s_ref, bn_b_ref,
                          wi1_ref, wh1_ref, b1_ref,
                          wi2_ref, wh2_ref, b2_ref,
                          wi3_ref, wh3_ref, b3_ref,
                          wfc_ref, bfc_ref,
                          out_ref,
                          g1_ref, s1_ref, g2_ref, s2_ref, g3_ref, s3_ref):
    # Inference BatchNorm1d folded into per-feature scale/shift (f32 math),
    # result cast to bf16 as the layer-1 MXU operand.
    x = x_ref[...].astype(jnp.float32) * bn_s_ref[...] + bn_b_ref[...]
    x = x.astype(jnp.bfloat16)                                   # (T*bb, D)

    _lstm_layer(x, wi1_ref, wh1_ref, b1_ref, g1_ref, s1_ref, T, bb)
    _lstm_layer(s1_ref[...].astype(jnp.bfloat16),
                wi2_ref, wh2_ref, b2_ref, g2_ref, s2_ref, T, bb)
    _lstm_layer(s2_ref[...].astype(jnp.bfloat16),
                wi3_ref, wh3_ref, b3_ref, g3_ref, s3_ref, T, bb)

    # Final Linear(H3, 1) as a (1, H3) x (T*bb, H3)^T contraction so the block
    # output is a lane-major (1, T*bb) row (lane-dense store, no 1-lane column).
    out_ref[...] = (
        jax.lax.dot_general(wfc_ref[...], s3_ref[...],
                            (((1,), (1,)), ((), ())),
                            preferred_element_type=jnp.float32)
        + bfc_ref[...])


# ----------------------------------------------------------------------------
# Wrapper: embedding gathers, batch blocking, pallas_call, un-blocking.
# ----------------------------------------------------------------------------
def _pick_batch_block(batch, target=128):
    bb = max(1, min(batch, target))
    while batch % bb:
        bb -= 1
    return bb


def _vmem_limit_bytes(T, bb, D, H1, H2, H3):
    """Explicit scoped-VMEM budget, clamped to a cross-generation-safe window
    (v5e scoped default 16 MiB; v7x physical VMEM 64 MiB)."""
    f32, bf16 = 4, 2
    blocked = T * bb * (D * bf16 + f32)                       # x block + out row
    weights = ((D * 4 * H1 + H1 * 4 * H2 + H2 * 4 * H3) * bf16
               + (H1 * 4 * H1 + H2 * 4 * H2 + H3 * 4 * H3 + H3 + 1) * f32
               + (4 * (H1 + H2 + H3) + 2 * D) * f32)
    scratch = T * bb * 5 * (H1 + H2 + H3) * f32               # gates + seq
    est = 2 * blocked + 2 * weights + scratch                 # 2x: double buffer
    return int(min(32 << 20, max(16 << 20, 2 * est)))


def model_forward(params, stock, group, day, month, feature, batch_block=None):
    stock_emb = params['stock_emb'][stock]
    group_emb = params['group_emb'][group]
    day_emb = params['day_emb'][day]
    month_emb = params['month_emb'][month]
    x = jnp.concatenate([stock_emb, group_emb, day_emb, month_emb, feature],
                        axis=2).astype(jnp.float32)            # (B, T, D)
    B, T, D = x.shape

    bb = _pick_batch_block(B, 128 if batch_block is None else batch_block)
    nb = B // bb
    # (B, T, D) -> (nb, T*bb, D): time-major rows within each batch block,
    # bf16 for half the input DMA bytes / VMEM.
    x_blk = (x.reshape(nb, bb, T, D).transpose(0, 2, 1, 3)
              .reshape(nb, T * bb, D).astype(jnp.bfloat16))

    p1, p2, p3 = params['lstm1'], params['lstm2'], params['lstm3']
    H1, H2, H3 = p1['wh'].shape[0], p2['wh'].shape[0], p3['wh'].shape[0]

    def resident(shape):           # full array resident in VMEM for all blocks
        return pl.BlockSpec(shape, lambda i: (0,) * len(shape))

    out_blk = pl.pallas_call(
        functools.partial(_fused_forward_kernel, T, bb),
        grid=(nb,),
        out_shape=jax.ShapeDtypeStruct((nb, 1, T * bb), jnp.float32),
        in_specs=[
            pl.BlockSpec((None, T * bb, D), lambda i: (i, 0, 0)),   # x block
            resident((1, D)), resident((1, D)),                     # BN scale/shift
            resident((D, 4 * H1)), resident((H1, 4 * H1)), resident((1, 4 * H1)),
            resident((H1, 4 * H2)), resident((H2, 4 * H2)), resident((1, 4 * H2)),
            resident((H2, 4 * H3)), resident((H3, 4 * H3)), resident((1, 4 * H3)),
            resident((1, H3)), resident((1, 1)),                    # fc
        ],
        out_specs=pl.BlockSpec((None, 1, T * bb), lambda i: (i, 0, 0)),
        scratch_shapes=[
            pltpu.VMEM((T * bb, 4 * H1), jnp.float32),   # gates, layer 1
            pltpu.VMEM((T * bb, H1), jnp.float32),       # hidden seq, layer 1
            pltpu.VMEM((T * bb, 4 * H2), jnp.float32),
            pltpu.VMEM((T * bb, H2), jnp.float32),
            pltpu.VMEM((T * bb, 4 * H3), jnp.float32),
            pltpu.VMEM((T * bb, H3), jnp.float32),
        ],
        compiler_params=pltpu.CompilerParams(
            dimension_semantics=("parallel",),
            vmem_limit_bytes=_vmem_limit_bytes(T, bb, D, H1, H2, H3)),
    )(x_blk, params['bn_scale'], params['bn_shift'],
      p1['wi'], p1['wh'], p1['b'],
      p2['wi'], p2['wh'], p2['b'],
      p3['wi'], p3['wh'], p3['b'],
      params['wfc'], params['bfc'])

    # (nb, 1, T*bb) lane-major -> (B, T, 1); lane index = t*bb + local batch.
    out = out_blk.reshape(nb, T, bb).transpose(0, 2, 1).reshape(B, T, 1)
    return out


# ----------------------------------------------------------------------------
# Parameter construction (deterministic, synthetic, torch-equivalent layout).
# ----------------------------------------------------------------------------
def _nrm(key, shape, scale=0.1):
    return jax.random.normal(key, shape, jnp.float32) * scale


def make_lstm_params(key, d_in, h):
    ks = jax.random.split(key, 4)
    w_ih = _nrm(ks[0], (4 * h, d_in))      # torch layout, gate rows [i, f, g, o]
    w_hh = _nrm(ks[1], (4 * h, h))
    b_ih = _nrm(ks[2], (4 * h,))
    b_hh = _nrm(ks[3], (4 * h,))
    return {'wi': w_ih.T.astype(jnp.bfloat16),        # (d_in, 4h) bf16 MXU operand
            'wh': w_hh.T,                              # (h, 4h) f32 recurrent path
            'b': (b_ih + b_hh).reshape(1, 4 * h)}      # f32


def init_params(key, cfg):
    keys = jax.random.split(key, 13)
    p = {}
    p['stock_emb'] = _nrm(keys[0], (cfg['num_stocks'], cfg['embedding_dim_stock']))
    p['group_emb'] = _nrm(keys[1], (cfg['num_group'], cfg['embedding_dim_group']))
    p['day_emb'] = _nrm(keys[2], (cfg['num_day'], cfg['embedding_dim_day']))
    p['month_emb'] = _nrm(keys[3], (cfg['num_month'], cfg['embedding_dim_month']))
    D = (cfg['embedding_dim_stock'] + cfg['embedding_dim_group']
         + cfg['embedding_dim_day'] + cfg['embedding_dim_month']
         + cfg['feature_dim'])
    # BatchNorm1d(D), inference mode: fold gamma/beta/running stats.
    gamma = 1.0 + _nrm(keys[4], (D,))
    beta = _nrm(keys[5], (D,))
    r_mean = _nrm(keys[6], (D,))
    r_var = 1.0 + jnp.abs(_nrm(keys[7], (D,)))
    scale = gamma / jnp.sqrt(r_var + 1e-5)
    p['bn_scale'] = scale.reshape(1, D)
    p['bn_shift'] = (beta - r_mean * scale).reshape(1, D)
    p['lstm1'] = make_lstm_params(keys[8], D, cfg['first_layer_hidden_size'])
    p['lstm2'] = make_lstm_params(keys[9], cfg['first_layer_hidden_size'],
                                  cfg['second_layer_hidden_size'])
    p['lstm3'] = make_lstm_params(keys[10], cfg['second_layer_hidden_size'],
                                  cfg['third_layer_hidden_size'])
    p['wfc'] = _nrm(keys[11], (1, cfg['third_layer_hidden_size']))  # (1, H3) f32
    p['bfc'] = _nrm(keys[12], (1, 1))
    return p


# ----------------------------------------------------------------------------
# Pure-JAX f32 reference (torch-equivalent) for correctness checking.
# ----------------------------------------------------------------------------
def reference_forward(params, stock, group, day, month, feature):
    x = jnp.concatenate([params['stock_emb'][stock], params['group_emb'][group],
                         params['day_emb'][day], params['month_emb'][month],
                         feature], axis=2).astype(jnp.float32)
    x = x * params['bn_scale'] + params['bn_shift']
    B, T, _ = x.shape

    def lstm(seq, lp):
        wi = lp['wi'].astype(jnp.float32)
        wh = lp['wh'].astype(jnp.float32)
        b = lp['b']
        H = wh.shape[0]
        h = jnp.zeros((B, H), jnp.float32)
        c = jnp.zeros((B, H), jnp.float32)
        outs = []
        for t in range(T):
            g = seq[:, t] @ wi + b + h @ wh
            i = jax.nn.sigmoid(g[:, 0 * H:1 * H])
            f = jax.nn.sigmoid(g[:, 1 * H:2 * H])
            gg = jnp.tanh(g[:, 2 * H:3 * H])
            o = jax.nn.sigmoid(g[:, 3 * H:4 * H])
            c = f * c + i * gg
            h = o * jnp.tanh(c)
            outs.append(h)
        return jnp.stack(outs, axis=1)

    s = lstm(lstm(lstm(x, params['lstm1']), params['lstm2']), params['lstm3'])
    return s @ params['wfc'].astype(jnp.float32).T + params['bfc']


if __name__ == "__main__":
    B, T = 4, 8
    cfg = dict(num_stocks=10, num_group=5, num_day=7, num_month=12,
               embedding_dim_stock=8, embedding_dim_group=4,
               embedding_dim_day=4, embedding_dim_month=4,
               feature_dim=12,
               first_layer_hidden_size=32,
               second_layer_hidden_size=16,
               third_layer_hidden_size=16)

    key_params, key_inputs = jax.random.split(jax.random.PRNGKey(0))
    params = init_params(key_params, cfg)

    k1, k2, k3, k4, k5 = jax.random.split(key_inputs, 5)
    stock = jax.random.randint(k1, (B, T), 0, cfg['num_stocks'])
    group = jax.random.randint(k2, (B, T), 0, cfg['num_group'])
    day = jax.random.randint(k3, (B, T), 0, cfg['num_day'])
    month = jax.random.randint(k4, (B, T), 0, cfg['num_month'])
    feature = jax.random.normal(k5, (B, T, cfg['feature_dim']), jnp.float32)

    fwd = jax.jit(functools.partial(model_forward, batch_block=2))  # grid=(2,)
    out = fwd(params, stock, group, day, month, feature)
    jax.block_until_ready(out)
    assert out.shape == (B, T, 1)
    assert bool(jnp.all(jnp.isfinite(out)))

    ref = reference_forward(params, stock, group, day, month, feature)
    max_err = float(jnp.max(jnp.abs(out - ref)))
    assert jnp.allclose(out, ref, atol=3e-2, rtol=3e-2), max_err
    print("KERNEL_OK")
</pallas_src>

<mosaic_0001>
module attributes {stable_mosaic.version = 11 : i64} {
  func.func @_fused_forward_kernel(%arg0: i32, %arg1: memref<1x16x32xbf16, #tpu.memory_space<vmem>>, %arg2: memref<1x32xf32, #tpu.memory_space<vmem>>, %arg3: memref<1x32xf32, #tpu.memory_space<vmem>>, %arg4: memref<32x128xbf16, #tpu.memory_space<vmem>>, %arg5: memref<32x128xf32, #tpu.memory_space<vmem>>, %arg6: memref<1x128xf32, #tpu.memory_space<vmem>>, %arg7: memref<32x64xbf16, #tpu.memory_space<vmem>>, %arg8: memref<16x64xf32, #tpu.memory_space<vmem>>, %arg9: memref<1x64xf32, #tpu.memory_space<vmem>>, %arg10: memref<16x64xbf16, #tpu.memory_space<vmem>>, %arg11: memref<16x64xf32, #tpu.memory_space<vmem>>, %arg12: memref<1x64xf32, #tpu.memory_space<vmem>>, %arg13: memref<1x16xf32, #tpu.memory_space<vmem>>, %arg14: memref<1x1xf32, #tpu.memory_space<vmem>>, %arg15: memref<1x1x16xf32, #tpu.memory_space<vmem>>, %arg16: memref<16x128xf32, #tpu.memory_space<vmem>>, %arg17: memref<16x32xf32, #tpu.memory_space<vmem>>, %arg18: memref<16x64xf32, #tpu.memory_space<vmem>>, %arg19: memref<16x16xf32, #tpu.memory_space<vmem>>, %arg20: memref<16x64xf32, #tpu.memory_space<vmem>>, %arg21: memref<16x16xf32, #tpu.memory_space<vmem>>) attributes {dimension_semantics = [#tpu.dimension_semantics<parallel>], iteration_bounds = array<i64: 2>, scalar_prefetch = 0 : i64, scratch_operands = 6 : i64, tpu.core_type = #tpu.core_type<tc>, window_params = [{transform_indices = @transform_0, window_bounds = array<i64: 1, 16, 32>}, {pipeline_mode = #tpu.pipeline_mode<synchronous>, transform_indices = @transform_1, window_bounds = array<i64: 1, 32>}, {pipeline_mode = #tpu.pipeline_mode<synchronous>, transform_indices = @transform_2, window_bounds = array<i64: 1, 32>}, {pipeline_mode = #tpu.pipeline_mode<synchronous>, transform_indices = @transform_3, window_bounds = array<i64: 32, 128>}, {pipeline_mode = #tpu.pipeline_mode<synchronous>, transform_indices = @transform_4, window_bounds = array<i64: 32, 128>}, {pipeline_mode = #tpu.pipeline_mode<synchronous>, transform_indices = @transform_5, window_bounds = array<i64: 1, 128>}, {pipeline_mode = #tpu.pipeline_mode<synchronous>, transform_indices = @transform_6, window_bounds = array<i64: 32, 64>}, {pipeline_mode = #tpu.pipeline_mode<synchronous>, transform_indices = @transform_7, window_bounds = array<i64: 16, 64>}, {pipeline_mode = #tpu.pipeline_mode<synchronous>, transform_indices = @transform_8, window_bounds = array<i64: 1, 64>}, {pipeline_mode = #tpu.pipeline_mode<synchronous>, transform_indices = @transform_9, window_bounds = array<i64: 16, 64>}, {pipeline_mode = #tpu.pipeline_mode<synchronous>, transform_indices = @transform_10, window_bounds = array<i64: 16, 64>}, {pipeline_mode = #tpu.pipeline_mode<synchronous>, transform_indices = @transform_11, window_bounds = array<i64: 1, 64>}, {pipeline_mode = #tpu.pipeline_mode<synchronous>, transform_indices = @transform_12, window_bounds = array<i64: 1, 16>}, {pipeline_mode = #tpu.pipeline_mode<synchronous>, transform_indices = @transform_13, window_bounds = array<i64: 1, 1>}, {transform_indices = @transform_14, window_bounds = array<i64: 1, 1, 16>}]} {
    %c0 = arith.constant 0 : index
    %c0_0 = arith.constant 0 : index
    %c0_1 = arith.constant 0 : index
    %0 = vector.load %arg1[%c0, %c0_0, %c0_1] : memref<1x16x32xbf16, #tpu.memory_space<vmem>>, vector<1x16x32xbf16>
    %1 = vector.shape_cast %0 : vector<1x16x32xbf16> to vector<16x32xbf16>
    %2 = arith.extf %1 : vector<16x32xbf16> to vector<16x32xf32>
    %c0_2 = arith.constant 0 : index
    %c0_3 = arith.constant 0 : index
    %3 = vector.load %arg2[%c0_2, %c0_3] : memref<1x32xf32, #tpu.memory_space<vmem>>, vector<1x32xf32>
    %4 = vector.broadcast %3 : vector<1x32xf32> to vector<16x32xf32>
    %5 = arith.mulf %2, %4 : vector<16x32xf32>
    %c0_4 = arith.constant 0 : index
    %c0_5 = arith.constant 0 : index
    %6 = vector.load %arg3[%c0_4, %c0_5] : memref<1x32xf32, #tpu.memory_space<vmem>>, vector<1x32xf32>
    %7 = vector.broadcast %6 : vector<1x32xf32> to vector<16x32xf32>
    %8 = arith.addf %5, %7 : vector<16x32xf32>
    %9 = arith.truncf %8 : vector<16x32xf32> to vector<16x32xbf16>
    %c0_6 = arith.constant 0 : index
    %c0_7 = arith.constant 0 : index
    %10 = vector.load %arg4[%c0_6, %c0_7] : memref<32x128xbf16, #tpu.memory_space<vmem>>, vector<32x128xbf16>
    %cst = arith.constant dense<0.000000e+00> : vector<16x128xf32>
    %11 = tpu.matmul %9, %10, %cst {dimension_numbers = #tpu.dot_dimension_numbers<[1], [0], [0], [1], [0, 0, 1, 1], [], []>} : vector<16x32xbf16>, vector<32x128xbf16>, vector<16x128xf32> -> vector<16x128xf32>
    %c0_8 = arith.constant 0 : index
    %c0_9 = arith.constant 0 : index
    %12 = vector.load %arg6[%c0_8, %c0_9] : memref<1x128xf32, #tpu.memory_space<vmem>>, vector<1x128xf32>
    %13 = vector.broadcast %12 : vector<1x128xf32> to vector<16x128xf32>
    %14 = arith.addf %11, %13 : vector<16x128xf32>
    %c0_10 = arith.constant 0 : index
    %c0_11 = arith.constant 0 : index
    %15 = vector.load %arg16[%c0_10, %c0_11] : memref<16x128xf32, #tpu.memory_space<vmem>>, vector<16x128xf32>
    tpu.vector_store %arg16[%c0_10, %c0_11], %14 {strides = array<i32>} : memref<16x128xf32, #tpu.memory_space<vmem>>, vector<16x128xf32>,
    %c0_12 = arith.constant 0 : index
    %c0_13 = arith.constant 0 : index
    %16 = vector.load %arg5[%c0_12, %c0_13] : memref<32x128xf32, #tpu.memory_space<vmem>>, vector<32x128xf32>
    %cst_14 = arith.constant 0.000000e+00 : f32
    %17 = vector.broadcast %cst_14 : f32 to vector<2x32xf32>
    %c0_i32 = arith.constant 0 : i32
    %c2_i32 = arith.constant 2 : i32
    %18 = arith.muli %c0_i32, %c2_i32 : i32
    %19 = tpu.assume_multiple %18, 2 : i32
    %20 = arith.index_cast %19 : i32 to index
    %c0_15 = arith.constant 0 : index
    %21 = vector.load %arg16[%20, %c0_15] : memref<16x128xf32, #tpu.memory_space<vmem>>, vector<2x128xf32>
    %cst_16 = arith.constant dense<0.000000e+00> : vector<2x128xf32>
    %22 = tpu.matmul %17, %16, %cst_16 {dimension_numbers = #tpu.dot_dimension_numbers<[1], [0], [0], [1], [0, 0, 1, 1], [], []>} : vector<2x32xf32>, vector<32x128xf32>, vector<2x128xf32> -> vector<2x128xf32>
    %23 = arith.addf %21, %22 : vector<2x128xf32>
    %24 = arith.negf %23 : vector<2x128xf32>
    %25 = math.exp %24 : vector<2x128xf32>
    %cst_17 = arith.constant 1.000000e+00 : f32
    %26 = vector.broadcast %cst_17 : f32 to vector<2x128xf32>
    %27 = arith.addf %26, %25 : vector<2x128xf32>
    %28 = arith.divf %26, %27 : vector<2x128xf32>
    %29 = math.tanh %23 : vector<2x128xf32>
    %30 = vector.extract_strided_slice %28 {offsets = [0, 0], sizes = [2, 32], strides = [1, 1]} : vector<2x128xf32> to vector<2x32xf32>
    %31 = vector.extract_strided_slice %28 {offsets = [0, 32], sizes = [2, 32], strides = [1, 1]} : vector<2x128xf32> to vector<2x32xf32>
    %32 = vector.extract_strided_slice %29 {offsets = [0, 64], sizes = [2, 32], strides = [1, 1]} : vector<2x128xf32> to vector<2x32xf32>
    %33 = vector.extract_strided_slice %28 {offsets = [0, 96], sizes = [2, 32], strides = [1, 1]} : vector<2x128xf32> to vector<2x32xf32>
    %34 = arith.mulf %31, %17 : vector<2x32xf32>
    %35 = arith.mulf %30, %32 : vector<2x32xf32>
    %36 = arith.addf %34, %35 : vector<2x32xf32>
    %37 = math.tanh %36 : vector<2x32xf32>
    %38 = arith.mulf %33, %37 : vector<2x32xf32>
    %39 = arith.index_cast %19 : i32 to index
    %c0_18 = arith.constant 0 : index
    %40 = vector.load %arg17[%39, %c0_18] : memref<16x32xf32, #tpu.memory_space<vmem>>, vector<2x32xf32>
    tpu.vector_store %arg17[%39, %c0_18], %38 {strides = array<i32>} : memref<16x32xf32, #tpu.memory_space<vmem>>, vector<2x32xf32>,
    %c1_i32 = arith.constant 1 : i32
    %c2_i32_19 = arith.constant 2 : i32
    %41 = arith.muli %c1_i32, %c2_i32_19 : i32
    %42 = tpu.assume_multiple %41, 2 : i32
    %43 = arith.index_cast %42 : i32 to index
    %c0_20 = arith.constant 0 : index
    %44 = vector.load %arg16[%43, %c0_20] : memref<16x128xf32, #tpu.memory_space<vmem>>, vector<2x128xf32>
    %cst_21 = arith.constant dense<0.000000e+00> : vector<2x128xf32>
    %45 = tpu.matmul %38, %16, %cst_21 {dimension_numbers = #tpu.dot_dimension_numbers<[1], [0], [0], [1], [0, 0, 1, 1], [], []>} : vector<2x32xf32>, vector<32x128xf32>, vector<2x128xf32> -> vector<2x128xf32>
    %46 = arith.addf %44, %45 : vector<2x128xf32>
    %47 = arith.negf %46 : vector<2x128xf32>
    %48 = math.exp %47 : vector<2x128xf32>
    %cst_22 = arith.constant 1.000000e+00 : f32
    %49 = vector.broadcast %cst_22 : f32 to vector<2x128xf32>
    %50 = arith.addf %49, %48 : vector<2x128xf32>
    %51 = arith.divf %49, %50 : vector<2x128xf32>
    %52 = math.tanh %46 : vector<2x128xf32>
    %53 = vector.extract_strided_slice %51 {offsets = [0, 0], sizes = [2, 32], strides = [1, 1]} : vector<2x128xf32> to vector<2x32xf32>
    %54 = vector.extract_strided_slice %51 {offsets = [0, 32], sizes = [2, 32], strides = [1, 1]} : vector<2x128xf32> to vector<2x32xf32>
    %55 = vector.extract_strided_slice %52 {offsets = [0, 64], sizes = [2, 32], strides = [1, 1]} : vector<2x128xf32> to vector<2x32xf32>
    %56 = vector.extract_strided_slice %51 {offsets = [0, 96], sizes = [2, 32], strides = [1, 1]} : vector<2x128xf32> to vector<2x32xf32>
    %57 = arith.mulf %54, %36 : vector<2x32xf32>
    %58 = arith.mulf %53, %55 : vector<2x32xf32>
    %59 = arith.addf %57, %58 : vector<2x32xf32>
    %60 = math.tanh %59 : vector<2x32xf32>
    %61 = arith.mulf %56, %60 : vector<2x32xf32>
    %62 = arith.index_cast %42 : i32 to index
    %c0_23 = arith.constant 0 : index
    %63 = vector.load %arg17[%62, %c0_23] : memref<16x32xf32, #tpu.memory_space<vmem>>, vector<2x32xf32>
    tpu.vector_store %arg17[%62, %c0_23], %61 {strides = array<i32>} : memref<16x32xf32, #tpu.memory_space<vmem>>, vector<2x32xf32>,
    %c2_i32_24 = arith.constant 2 : i32
    %c2_i32_25 = arith.constant 2 : i32
    %64 = arith.muli %c2_i32_24, %c2_i32_25 : i32
    %65 = tpu.assume_multiple %64, 2 : i32
    %66 = arith.index_cast %65 : i32 to index
    %c0_26 = arith.constant 0 : index
    %67 = vector.load %arg16[%66, %c0_26] : memref<16x128xf32, #tpu.memory_space<vmem>>, vector<2x128xf32>
    %cst_27 = arith.constant dense<0.000000e+00> : vector<2x128xf32>
    %68 = tpu.matmul %61, %16, %cst_27 {dimension_numbers = #tpu.dot_dimension_numbers<[1], [0], [0], [1], [0, 0, 1, 1], [], []>} : vector<2x32xf32>, vector<32x128xf32>, vector<2x128xf32> -> vector<2x128xf32>
    %69 = arith.addf %67, %68 : vector<2x128xf32>
    %70 = arith.negf %69 : vector<2x128xf32>
    %71 = math.exp %70 : vector<2x128xf32>
    %cst_28 = arith.constant 1.000000e+00 : f32
    %72 = vector.broadcast %cst_28 : f32 to vector<2x128xf32>
    %73 = arith.addf %72, %71 : vector<2x128xf32>
    %74 = arith.divf %72, %73 : vector<2x128xf32>
    %75 = math.tanh %69 : vector<2x128xf32>
    %76 = vector.extract_strided_slice %74 {offsets = [0, 0], sizes = [2, 32], strides = [1, 1]} : vector<2x128xf32> to vector<2x32xf32>
    %77 = vector.extract_strided_slice %74 {offsets = [0, 32], sizes = [2, 32], strides = [1, 1]} : vector<2x128xf32> to vector<2x32xf32>
    %78 = vector.extract_strided_slice %75 {offsets = [0, 64], sizes = [2, 32], strides = [1, 1]} : vector<2x128xf32> to vector<2x32xf32>
    %79 = vector.extract_strided_slice %74 {offsets = [0, 96], sizes = [2, 32], strides = [1, 1]} : vector<2x128xf32> to vector<2x32xf32>
    %80 = arith.mulf %77, %59 : vector<2x32xf32>
    %81 = arith.mulf %76, %78 : vector<2x32xf32>
    %82 = arith.addf %80, %81 : vector<2x32xf32>
    %83 = math.tanh %82 : vector<2x32xf32>
    %84 = arith.mulf %79, %83 : vector<2x32xf32>
    %85 = arith.index_cast %65 : i32 to index
    %c0_29 = arith.constant 0 : index
    %86 = vector.load %arg17[%85, %c0_29] : memref<16x32xf32, #tpu.memory_space<vmem>>, vector<2x32xf32>
    tpu.vector_store %arg17[%85, %c0_29], %84 {strides = array<i32>} : memref<16x32xf32, #tpu.memory_space<vmem>>, vector<2x32xf32>,
    %c3_i32 = arith.constant 3 : i32
    %c2_i32_30 = arith.constant 2 : i32
    %87 = arith.muli %c3_i32, %c2_i32_30 : i32
    %88 = tpu.assume_multiple %87, 2 : i32
    %89 = arith.index_cast %88 : i32 to index
    %c0_31 = arith.constant 0 : index
    %90 = vector.load %arg16[%89, %c0_31] : memref<16x128xf32, #tpu.memory_space<vmem>>, vector<2x128xf32>
    %cst_32 = arith.constant dense<0.000000e+00> : vector<2x128xf32>
    %91 = tpu.matmul %84, %16, %cst_32 {dimension_numbers = #tpu.dot_dimension_numbers<[1], [0], [0], [1], [0, 0, 1, 1], [], []>} : vector<2x32xf32>, vector<32x128xf32>, vector<2x128xf32> -> vector<2x128xf32>
    %92 = arith.addf %90, %91 : vector<2x128xf32>
    %93 = arith.negf %92 : vector<2x128xf32>
    %94 = math.exp %93 : vector<2x128xf32>
    %cst_33 = arith.constant 1.000000e+00 : f32
    %95 = vector.broadcast %cst_33 : f32 to vector<2x128xf32>
    %96 = arith.addf %95, %94 : vector<2x128xf32>
    %97 = arith.divf %95, %96 : vector<2x128xf32>
    %98 = math.tanh %92 : vector<2x128xf32>
    %99 = vector.extract_strided_slice %97 {offsets = [0, 0], sizes = [2, 32], strides = [1, 1]} : vector<2x128xf32> to vector<2x32xf32>
    %100 = vector.extract_strided_slice %97 {offsets = [0, 32], sizes = [2, 32], strides = [1, 1]} : vector<2x128xf32> to vector<2x32xf32>
    %101 = vector.extract_strided_slice %98 {offsets = [0, 64], sizes = [2, 32], strides = [1, 1]} : vector<2x128xf32> to vector<2x32xf32>
    %102 = vector.extract_strided_slice %97 {offsets = [0, 96], sizes = [2, 32], strides = [1, 1]} : vector<2x128xf32> to vector<2x32xf32>
    %103 = arith.mulf %100, %82 : vector<2x32xf32>
    %104 = arith.mulf %99, %101 : vector<2x32xf32>
    %105 = arith.addf %103, %104 : vector<2x32xf32>
    %106 = math.tanh %105 : vector<2x32xf32>
    %107 = arith.mulf %102, %106 : vector<2x32xf32>
    %108 = arith.index_cast %88 : i32 to index
    %c0_34 = arith.constant 0 : index
    %109 = vector.load %arg17[%108, %c0_34] : memref<16x32xf32, #tpu.memory_space<vmem>>, vector<2x32xf32>
    tpu.vector_store %arg17[%108, %c0_34], %107 {strides = array<i32>} : memref<16x32xf32, #tpu.memory_space<vmem>>, vector<2x32xf32>,
    %c4_i32 = arith.constant 4 : i32
    %c2_i32_35 = arith.constant 2 : i32
    %110 = arith.muli %c4_i32, %c2_i32_35 : i32
    %111 = tpu.assume_multiple %110, 2 : i32
    %112 = arith.index_cast %111 : i32 to index
    %c0_36 = arith.constant 0 : index
    %113 = vector.load %arg16[%112, %c0_36] : memref<16x128xf32, #tpu.memory_space<vmem>>, vector<2x128xf32>
    %cst_37 = arith.constant dense<0.000000e+00> : vector<2x128xf32>
    %114 = tpu.matmul %107, %16, %cst_37 {dimension_numbers = #tpu.dot_dimension_numbers<[1], [0], [0], [1], [0, 0, 1, 1], [], []>} : vector<2x32xf32>, vector<32x128xf32>, vector<2x128xf32> -> vector<2x128xf32>
    %115 = arith.addf %113, %114 : vector<2x128xf32>
    %116 = arith.negf %115 : vector<2x128xf32>
    %117 = math.exp %116 : vector<2x128xf32>
    %cst_38 = arith.constant 1.000000e+00 : f32
    %118 = vector.broadcast %cst_38 : f32 to vector<2x128xf32>
    %119 = arith.addf %118, %117 : vector<2x128xf32>
    %120 = arith.divf %118, %119 : vector<2x128xf32>
    %121 = math.tanh %115 : vector<2x128xf32>
    %122 = vector.extract_strided_slice %120 {offsets = [0, 0], sizes = [2, 32], strides = [1, 1]} : vector<2x128xf32> to vector<2x32xf32>
    %123 = vector.extract_strided_slice %120 {offsets = [0, 32], sizes = [2, 32], strides = [1, 1]} : vector<2x128xf32> to vector<2x32xf32>
    %124 = vector.extract_strided_slice %121 {offsets = [0, 64], sizes = [2, 32], strides = [1, 1]} : vector<2x128xf32> to vector<2x32xf32>
    %125 = vector.extract_strided_slice %120 {offsets = [0, 96], sizes = [2, 32], strides = [1, 1]} : vector<2x128xf32> to vector<2x32xf32>
    %126 = arith.mulf %123, %105 : vector<2x32xf32>
    %127 = arith.mulf %122, %124 : vector<2x32xf32>
    %128 = arith.addf %126, %127 : vector<2x32xf32>
    %129 = math.tanh %128 : vector<2x32xf32>
    %130 = arith.mulf %125, %129 : vector<2x32xf32>
    %131 = arith.index_cast %111 : i32 to index
    %c0_39 = arith.constant 0 : index
    %132 = vector.load %arg17[%131, %c0_39] : memref<16x32xf32, #tpu.memory_space<vmem>>, vector<2x32xf32>
    tpu.vector_store %arg17[%131, %c0_39], %130 {strides = array<i32>} : memref<16x32xf32, #tpu.memory_space<vmem>>, vector<2x32xf32>,
    %c5_i32 = arith.constant 5 : i32
    %c2_i32_40 = arith.constant 2 : i32
    %133 = arith.muli %c5_i32, %c2_i32_40 : i32
    %134 = tpu.assume_multiple %133, 2 : i32
    %135 = arith.index_cast %134 : i32 to index
    %c0_41 = arith.constant 0 : index
    %136 = vector.load %arg16[%135, %c0_41] : memref<16x128xf32, #tpu.memory_space<vmem>>, vector<2x128xf32>
    %cst_42 = arith.constant dense<0.000000e+00> : vector<2x128xf32>
    %137 = tpu.matmul %130, %16, %cst_42 {dimension_numbers = #tpu.dot_dimension_numbers<[1], [0], [0], [1], [0, 0, 1, 1], [], []>} : vector<2x32xf32>, vector<32x128xf32>, vector<2x128xf32> -> vector<2x128xf32>
    %138 = arith.addf %136, %137 : vector<2x128xf32>
    %139 = arith.negf %138 : vector<2x128xf32>
    %140 = math.exp %139 : vector<2x128xf32>
    %cst_43 = arith.constant 1.000000e+00 : f32
    %141 = vector.broadcast %cst_43 : f32 to vector<2x128xf32>
    %142 = arith.addf %141, %140 : vector<2x128xf32>
    %143 = arith.divf %141, %142 : vector<2x128xf32>
    %144 = math.tanh %138 : vector<2x128xf32>
    %145 = vector.extract_strided_slice %143 {offsets = [0, 0], sizes = [2, 32], strides = [1, 1]} : vector<2x128xf32> to vector<2x32xf32>
    %146 = vector.extract_strided_slice %143 {offsets = [0, 32], sizes = [2, 32], strides = [1, 1]} : vector<2x128xf32> to vector<2x32xf32>
    %147 = vector.extract_strided_slice %144 {offsets = [0, 64], sizes = [2, 32], strides = [1, 1]} : vector<2x128xf32> to vector<2x32xf32>
    %148 = vector.extract_strided_slice %143 {offsets = [0, 96], sizes = [2, 32], strides = [1, 1]} : vector<2x128xf32> to vector<2x32xf32>
    %149 = arith.mulf %146, %128 : vector<2x32xf32>
    %150 = arith.mulf %145, %147 : vector<2x32xf32>
    %151 = arith.addf %149, %150 : vector<2x32xf32>
    %152 = math.tanh %151 : vector<2x32xf32>
    %153 = arith.mulf %148, %152 : vector<2x32xf32>
    %154 = arith.index_cast %134 : i32 to index
    %c0_44 = arith.constant 0 : index
    %155 = vector.load %arg17[%154, %c0_44] : memref<16x32xf32, #tpu.memory_space<vmem>>, vector<2x32xf32>
    tpu.vector_store %arg17[%154, %c0_44], %153 {strides = array<i32>} : memref<16x32xf32, #tpu.memory_space<vmem>>, vector<2x32xf32>,
    %c6_i32 = arith.constant 6 : i32
    %c2_i32_45 = arith.constant 2 : i32
    %156 = arith.muli %c6_i32, %c2_i32_45 : i32
    %157 = tpu.assume_multiple %156, 2 : i32
    %158 = arith.index_cast %157 : i32 to index
    %c0_46 = arith.constant 0 : index
    %159 = vector.load %arg16[%158, %c0_46] : memref<16x128xf32, #tpu.memory_space<vmem>>, vector<2x128xf32>
    %cst_47 = arith.constant dense<0.000000e+00> : vector<2x128xf32>
    %160 = tpu.matmul %153, %16, %cst_47 {dimension_numbers = #tpu.dot_dimension_numbers<[1], [0], [0], [1], [0, 0, 1, 1], [], []>} : vector<2x32xf32>, vector<32x128xf32>, vector<2x128xf32> -> vector<2x128xf32>
    %161 = arith.addf %159, %160 : vector<2x128xf32>
    %162 = arith.negf %161 : vector<2x128xf32>
    %163 = math.exp %162 : vector<2x128xf32>
    %cst_48 = arith.constant 1.000000e+00 : f32
    %164 = vector.broadcast %cst_48 : f32 to vector<2x128xf32>
    %165 = arith.addf %164, %163 : vector<2x128xf32>
    %166 = arith.divf %164, %165 : vector<2x128xf32>
    %167 = math.tanh %161 : vector<2x128xf32>
    %168 = vector.extract_strided_slice %166 {offsets = [0, 0], sizes = [2, 32], strides = [1, 1]} : vector<2x128xf32> to vector<2x32xf32>
    %169 = vector.extract_strided_slice %166 {offsets = [0, 32], sizes = [2, 32], strides = [1, 1]} : vector<2x128xf32> to vector<2x32xf32>
    %170 = vector.extract_strided_slice %167 {offsets = [0, 64], sizes = [2, 32], strides = [1, 1]} : vector<2x128xf32> to vector<2x32xf32>
    %171 = vector.extract_strided_slice %166 {offsets = [0, 96], sizes = [2, 32], strides = [1, 1]} : vector<2x128xf32> to vector<2x32xf32>
    %172 = arith.mulf %169, %151 : vector<2x32xf32>
    %173 = arith.mulf %168, %170 : vector<2x32xf32>
    %174 = arith.addf %172, %173 : vector<2x32xf32>
    %175 = math.tanh %174 : vector<2x32xf32>
    %176 = arith.mulf %171, %175 : vector<2x32xf32>
    %177 = arith.index_cast %157 : i32 to index
    %c0_49 = arith.constant 0 : index
    %178 = vector.load %arg17[%177, %c0_49] : memref<16x32xf32, #tpu.memory_space<vmem>>, vector<2x32xf32>
    tpu.vector_store %arg17[%177, %c0_49], %176 {strides = array<i32>} : memref<16x32xf32, #tpu.memory_space<vmem>>, vector<2x32xf32>,
    %c7_i32 = arith.constant 7 : i32
    %c2_i32_50 = arith.constant 2 : i32
    %179 = arith.muli %c7_i32, %c2_i32_50 : i32
    %180 = tpu.assume_multiple %179, 2 : i32
    %181 = arith.index_cast %180 : i32 to index
    %c0_51 = arith.constant 0 : index
    %182 = vector.load %arg16[%181, %c0_51] : memref<16x128xf32, #tpu.memory_space<vmem>>, vector<2x128xf32>
    %cst_52 = arith.constant dense<0.000000e+00> : vector<2x128xf32>
    %183 = tpu.matmul %176, %16, %cst_52 {dimension_numbers = #tpu.dot_dimension_numbers<[1], [0], [0], [1], [0, 0, 1, 1], [], []>} : vector<2x32xf32>, vector<32x128xf32>, vector<2x128xf32> -> vector<2x128xf32>
    %184 = arith.addf %182, %183 : vector<2x128xf32>
    %185 = arith.negf %184 : vector<2x128xf32>
    %186 = math.exp %185 : vector<2x128xf32>
    %cst_53 = arith.constant 1.000000e+00 : f32
    %187 = vector.broadcast %cst_53 : f32 to vector<2x128xf32>
    %188 = arith.addf %187, %186 : vector<2x128xf32>
    %189 = arith.divf %187, %188 : vector<2x128xf32>
    %190 = math.tanh %184 : vector<2x128xf32>
    %191 = vector.extract_strided_slice %189 {offsets = [0, 0], sizes = [2, 32], strides = [1, 1]} : vector<2x128xf32> to vector<2x32xf32>
    %192 = vector.extract_strided_slice %189 {offsets = [0, 32], sizes = [2, 32], strides = [1, 1]} : vector<2x128xf32> to vector<2x32xf32>
    %193 = vector.extract_strided_slice %190 {offsets = [0, 64], sizes = [2, 32], strides = [1, 1]} : vector<2x128xf32> to vector<2x32xf32>
    %194 = vector.extract_strided_slice %189 {offsets = [0, 96], sizes = [2, 32], strides = [1, 1]} : vector<2x128xf32> to vector<2x32xf32>
    %195 = arith.mulf %192, %174 : vector<2x32xf32>
    %196 = arith.mulf %191, %193 : vector<2x32xf32>
    %197 = arith.addf %195, %196 : vector<2x32xf32>
    %198 = math.tanh %197 : vector<2x32xf32>
    %199 = arith.mulf %194, %198 : vector<2x32xf32>
    %200 = arith.index_cast %180 : i32 to index
    %c0_54 = arith.constant 0 : index
    %201 = vector.load %arg17[%200, %c0_54] : memref<16x32xf32, #tpu.memory_space<vmem>>, vector<2x32xf32>
    tpu.vector_store %arg17[%200, %c0_54], %199 {strides = array<i32>} : memref<16x32xf32, #tpu.memory_space<vmem>>, vector<2x32xf32>,
    %c8_i32 = arith.constant 8 : i32
    %c0_55 = arith.constant 0 : index
    %c0_56 = arith.constant 0 : index
    %202 = vector.load %arg17[%c0_55, %c0_56] : memref<16x32xf32, #tpu.memory_space<vmem>>, vector<16x32xf32>
    %203 = arith.truncf %202 : vector<16x32xf32> to vector<16x32xbf16>
    %c0_57 = arith.constant 0 : index
    %c0_58 = arith.constant 0 : index
    %204 = vector.load %arg7[%c0_57, %c0_58] : memref<32x64xbf16, #tpu.memory_space<vmem>>, vector<32x64xbf16>
    %cst_59 = arith.constant dense<0.000000e+00> : vector<16x64xf32>
    %205 = tpu.matmul %203, %204, %cst_59 {dimension_numbers = #tpu.dot_dimension_numbers<[1], [0], [0], [1], [0, 0, 1, 1], [], []>} : vector<16x32xbf16>, vector<32x64xbf16>, vector<16x64xf32> -> vector<16x64xf32>
    %c0_60 = arith.constant 0 : index
    %c0_61 = arith.constant 0 : index
    %206 = vector.load %arg9[%c0_60, %c0_61] : memref<1x64xf32, #tpu.memory_space<vmem>>, vector<1x64xf32>
    %207 = vector.broadcast %206 : vector<1x64xf32> to vector<16x64xf32>
    %208 = arith.addf %205, %207 : vector<16x64xf32>
    %c0_62 = arith.constant 0 : index
    %c0_63 = arith.constant 0 : index
    %209 = vector.load %arg18[%c0_62, %c0_63] : memref<16x64xf32, #tpu.memory_space<vmem>>, vector<16x64xf32>
    tpu.vector_store %arg18[%c0_62, %c0_63], %208 {strides = array<i32>} : memref<16x64xf32, #tpu.memory_space<vmem>>, vector<16x64xf32>,
    %c0_64 = arith.constant 0 : index
    %c0_65 = arith.constant 0 : index
    %210 = vector.load %arg8[%c0_64, %c0_65] : memref<16x64xf32, #tpu.memory_space<vmem>>, vector<16x64xf32>
    %cst_66 = arith.constant 0.000000e+00 : f32
    %211 = vector.broadcast %cst_66 : f32 to vector<2x16xf32>
    %c0_i32_67 = arith.constant 0 : i32
    %c2_i32_68 = arith.constant 2 : i32
    %212 = arith.muli %c0_i32_67, %c2_i32_68 : i32
    %213 = tpu.assume_multiple %212, 2 : i32
    %214 = arith.index_cast %213 : i32 to index
    %c0_69 = arith.constant 0 : index
    %215 = vector.load %arg18[%214, %c0_69] : memref<16x64xf32, #tpu.memory_space<vmem>>, vector<2x64xf32>
    %cst_70 = arith.constant dense<0.000000e+00> : vector<2x64xf32>
    %216 = tpu.matmul %211, %210, %cst_70 {dimension_numbers = #tpu.dot_dimension_numbers<[1], [0], [0], [1], [0, 0, 1, 1], [], []>} : vector<2x16xf32>, vector<16x64xf32>, vector<2x64xf32> -> vector<2x64xf32>
    %217 = arith.addf %215, %216 : vector<2x64xf32>
    %218 = arith.negf %217 : vector<2x64xf32>
    %219 = math.exp %218 : vector<2x64xf32>
    %cst_71 = arith.constant 1.000000e+00 : f32
    %220 = vector.broadcast %cst_71 : f32 to vector<2x64xf32>
    %221 = arith.addf %220, %219 : vector<2x64xf32>
    %222 = arith.divf %220, %221 : vector<2x64xf32>
    %223 = math.tanh %217 : vector<2x64xf32>
    %224 = vector.extract_strided_slice %222 {offsets = [0, 0], sizes = [2, 16], strides = [1, 1]} : vector<2x64xf32> to vector<2x16xf32>
    %225 = vector.extract_strided_slice %222 {offsets = [0, 16], sizes = [2, 16], strides = [1, 1]} : vector<2x64xf32> to vector<2x16xf32>
    %226 = vector.extract_strided_slice %223 {offsets = [0, 32], sizes = [2, 16], strides = [1, 1]} : vector<2x64xf32> to vector<2x16xf32>
    %227 = vector.extract_strided_slice %222 {offsets = [0, 48], sizes = [2, 16], strides = [1, 1]} : vector<2x64xf32> to vector<2x16xf32>
    %228 = arith.mulf %225, %211 : vector<2x16xf32>
    %229 = arith.mulf %224, %226 : vector<2x16xf32>
    %230 = arith.addf %228, %229 : vector<2x16xf32>
    %231 = math.tanh %230 : vector<2x16xf32>
    %232 = arith.mulf %227, %231 : vector<2x16xf32>
    %233 = arith.index_cast %213 : i32 to index
    %c0_72 = arith.constant 0 : index
    %234 = vector.load %arg19[%233, %c0_72] : memref<16x16xf32, #tpu.memory_space<vmem>>, vector<2x16xf32>
    tpu.vector_store %arg19[%233, %c0_72], %232 {strides = array<i32>} : memref<16x16xf32, #tpu.memory_space<vmem>>, vector<2x16xf32>,
    %c1_i32_73 = arith.constant 1 : i32
    %c2_i32_74 = arith.constant 2 : i32
    %235 = arith.muli %c1_i32_73, %c2_i32_74 : i32
    %236 = tpu.assume_multiple %235, 2 : i32
    %237 = arith.index_cast %236 : i32 to index
    %c0_75 = arith.constant 0 : index
    %238 = vector.load %arg18[%237, %c0_75] : memref<16x64xf32, #tpu.memory_space<vmem>>, vector<2x64xf32>
    %cst_76 = arith.constant dense<0.000000e+00> : vector<2x64xf32>
    %239 = tpu.matmul %232, %210, %cst_76 {dimension_numbers = #tpu.dot_dimension_numbers<[1], [0], [0], [1], [0, 0, 1, 1], [], []>} : vector<2x16xf32>, vector<16x64xf32>, vector<2x64xf32> -> vector<2x64xf32>
    %240 = arith.addf %238, %239 : vector<2x64xf32>
    %241 = arith.negf %240 : vector<2x64xf32>
    %242 = math.exp %241 : vector<2x64xf32>
    %cst_77 = arith.constant 1.000000e+00 : f32
    %243 = vector.broadcast %cst_77 : f32 to vector<2x64xf32>
    %244 = arith.addf %243, %242 : vector<2x64xf32>
    %245 = arith.divf %243, %244 : vector<2x64xf32>
    %246 = math.tanh %240 : vector<2x64xf32>
    %247 = vector.extract_strided_slice %245 {offsets = [0, 0], sizes = [2, 16], strides = [1, 1]} : vector<2x64xf32> to vector<2x16xf32>
    %248 = vector.extract_strided_slice %245 {offsets = [0, 16], sizes = [2, 16], strides = [1, 1]} : vector<2x64xf32> to vector<2x16xf32>
    %249 = vector.extract_strided_slice %246 {offsets = [0, 32], sizes = [2, 16], strides = [1, 1]} : vector<2x64xf32> to vector<2x16xf32>
    %250 = vector.extract_strided_slice %245 {offsets = [0, 48], sizes = [2, 16], strides = [1, 1]} : vector<2x64xf32> to vector<2x16xf32>
    %251 = arith.mulf %248, %230 : vector<2x16xf32>
    %252 = arith.mulf %247, %249 : vector<2x16xf32>
    %253 = arith.addf %251, %252 : vector<2x16xf32>
    %254 = math.tanh %253 : vector<2x16xf32>
    %255 = arith.mulf %250, %254 : vector<2x16xf32>
    %256 = arith.index_cast %236 : i32 to index
    %c0_78 = arith.constant 0 : index
    %257 = vector.load %arg19[%256, %c0_78] : memref<16x16xf32, #tpu.memory_space<vmem>>, vector<2x16xf32>
    tpu.vector_store %arg19[%256, %c0_78], %255 {strides = array<i32>} : memref<16x16xf32, #tpu.memory_space<vmem>>, vector<2x16xf32>,
    %c2_i32_79 = arith.constant 2 : i32
    %c2_i32_80 = arith.constant 2 : i32
    %258 = arith.muli %c2_i32_79, %c2_i32_80 : i32
    %259 = tpu.assume_multiple %258, 2 : i32
    %260 = arith.index_cast %259 : i32 to index
    %c0_81 = arith.constant 0 : index
    %261 = vector.load %arg18[%260, %c0_81] : memref<16x64xf32, #tpu.memory_space<vmem>>, vector<2x64xf32>
    %cst_82 = arith.constant dense<0.000000e+00> : vector<2x64xf32>
    %262 = tpu.matmul %255, %210, %cst_82 {dimension_numbers = #tpu.dot_dimension_numbers<[1], [0], [0], [1], [0, 0, 1, 1], [], []>} : vector<2x16xf32>, vector<16x64xf32>, vector<2x64xf32> -> vector<2x64xf32>
    %263 = arith.addf %261, %262 : vector<2x64xf32>
    %264 = arith.negf %263 : vector<2x64xf32>
    %265 = math.exp %264 : vector<2x64xf32>
    %cst_83 = arith.constant 1.000000e+00 : f32
    %266 = vector.broadcast %cst_83 : f32 to vector<2x64xf32>
    %267 = arith.addf %266, %265 : vector<2x64xf32>
    %268 = arith.divf %266, %267 : vector<2x64xf32>
    %269 = math.tanh %263 : vector<2x64xf32>
    %270 = vector.extract_strided_slice %268 {offsets = [0, 0], sizes = [2, 16], strides = [1, 1]} : vector<2x64xf32> to vector<2x16xf32>
    %271 = vector.extract_strided_slice %268 {offsets = [0, 16], sizes = [2, 16], strides = [1, 1]} : vector<2x64xf32> to vector<2x16xf32>
    %272 = vector.extract_strided_slice %269 {offsets = [0, 32], sizes = [2, 16], strides = [1, 1]} : vector<2x64xf32> to vector<2x16xf32>
    %273 = vector.extract_strided_slice %268 {offsets = [0, 48], sizes = [2, 16], strides = [1, 1]} : vector<2x64xf32> to vector<2x16xf32>
    %274 = arith.mulf %271, %253 : vector<2x16xf32>
    %275 = arith.mulf %270, %272 : vector<2x16xf32>
    %276 = arith.addf %274, %275 : vector<2x16xf32>
    %277 = math.tanh %276 : vector<2x16xf32>
    %278 = arith.mulf %273, %277 : vector<2x16xf32>
    %279 = arith.index_cast %259 : i32 to index
    %c0_84 = arith.constant 0 : index
    %280 = vector.load %arg19[%279, %c0_84] : memref<16x16xf32, #tpu.memory_space<vmem>>, vector<2x16xf32>
    tpu.vector_store %arg19[%279, %c0_84], %278 {strides = array<i32>} : memref<16x16xf32, #tpu.memory_space<vmem>>, vector<2x16xf32>,
    %c3_i32_85 = arith.constant 3 : i32
    %c2_i32_86 = arith.constant 2 : i32
    %281 = arith.muli %c3_i32_85, %c2_i32_86 : i32
    %282 = tpu.assume_multiple %281, 2 : i32
    %283 = arith.index_cast %282 : i32 to index
    %c0_87 = arith.constant 0 : index
    %284 = vector.load %arg18[%283, %c0_87] : memref<16x64xf32, #tpu.memory_space<vmem>>, vector<2x64xf32>
    %cst_88 = arith.constant dense<0.000000e+00> : vector<2x64xf32>
    %285 = tpu.matmul %278, %210, %cst_88 {dimension_numbers = #tpu.dot_dimension_numbers<[1], [0], [0], [1], [0, 0, 1, 1], [], []>} : vector<2x16xf32>, vector<16x64xf32>, vector<2x64xf32> -> vector<2x64xf32>
    %286 = arith.addf %284, %285 : vector<2x64xf32>
    %287 = arith.negf %286 : vector<2x64xf32>
    %288 = math.exp %287 : vector<2x64xf32>
    %cst_89 = arith.constant 1.000000e+00 : f32
    %289 = vector.broadcast %cst_89 : f32 to vector<2x64xf32>
    %290 = arith.addf %289, %288 : vector<2x64xf32>
    %291 = arith.divf %289, %290 : vector<2x64xf32>
    %292 = math.tanh %286 : vector<2x64xf32>
    %293 = vector.extract_strided_slice %291 {offsets = [0, 0], sizes = [2, 16], strides = [1, 1]} : vector<2x64xf32> to vector<2x16xf32>
    %294 = vector.extract_strided_slice %291 {offsets = [0, 16], sizes = [2, 16], strides = [1, 1]} : vector<2x64xf32> to vector<2x16xf32>
    %295 = vector.extract_strided_slice %292 {offsets = [0, 32], sizes = [2, 16], strides = [1, 1]} : vector<2x64xf32> to vector<2x16xf32>
    %296 = vector.extract_strided_slice %291 {offsets = [0, 48], sizes = [2, 16], strides = [1, 1]} : vector<2x64xf32> to vector<2x16xf32>
    %297 = arith.mulf %294, %276 : vector<2x16xf32>
    %298 = arith.mulf %293, %295 : vector<2x16xf32>
    %299 = arith.addf %297, %298 : vector<2x16xf32>
    %300 = math.tanh %299 : vector<2x16xf32>
    %301 = arith.mulf %296, %300 : vector<2x16xf32>
    %302 = arith.index_cast %282 : i32 to index
    %c0_90 = arith.constant 0 : index
    %303 = vector.load %arg19[%302, %c0_90] : memref<16x16xf32, #tpu.memory_space<vmem>>, vector<2x16xf32>
    tpu.vector_store %arg19[%302, %c0_90], %301 {strides = array<i32>} : memref<16x16xf32, #tpu.memory_space<vmem>>, vector<2x16xf32>,
    %c4_i32_91 = arith.constant 4 : i32
    %c2_i32_92 = arith.constant 2 : i32
    %304 = arith.muli %c4_i32_91, %c2_i32_92 : i32
    %305 = tpu.assume_multiple %304, 2 : i32
    %306 = arith.index_cast %305 : i32 to index
    %c0_93 = arith.constant 0 : index
    %307 = vector.load %arg18[%306, %c0_93] : memref<16x64xf32, #tpu.memory_space<vmem>>, vector<2x64xf32>
    %cst_94 = arith.constant dense<0.000000e+00> : vector<2x64xf32>
    %308 = tpu.matmul %301, %210, %cst_94 {dimension_numbers = #tpu.dot_dimension_numbers<[1], [0], [0], [1], [0, 0, 1, 1], [], []>} : vector<2x16xf32>, vector<16x64xf32>, vector<2x64xf32> -> vector<2x64xf32>
    %309 = arith.addf %307, %308 : vector<2x64xf32>
    %310 = arith.negf %309 : vector<2x64xf32>
    %311 = math.exp %310 : vector<2x64xf32>
    %cst_95 = arith.constant 1.000000e+00 : f32
    %312 = vector.broadcast %cst_95 : f32 to vector<2x64xf32>
    %313 = arith.addf %312, %311 : vector<2x64xf32>
    %314 = arith.divf %312, %313 : vector<2x64xf32>
    %315 = math.tanh %309 : vector<2x64xf32>
    %316 = vector.extract_strided_slice %314 {offsets = [0, 0], sizes = [2, 16], strides = [1, 1]} : vector<2x64xf32> to vector<2x16xf32>
    %317 = vector.extract_strided_slice %314 {offsets = [0, 16], sizes = [2, 16], strides = [1, 1]} : vector<2x64xf32> to vector<2x16xf32>
    %318 = vector.extract_strided_slice %315 {offsets = [0, 32], sizes = [2, 16], strides = [1, 1]} : vector<2x64xf32> to vector<2x16xf32>
    %319 = vector.extract_strided_slice %314 {offsets = [0, 48], sizes = [2, 16], strides = [1, 1]} : vector<2x64xf32> to vector<2x16xf32>
    %320 = arith.mulf %317, %299 : vector<2x16xf32>
    %321 = arith.mulf %316, %318 : vector<2x16xf32>
    %322 = arith.addf %320, %321 : vector<2x16xf32>
    %323 = math.tanh %322 : vector<2x16xf32>
    %324 = arith.mulf %319, %323 : vector<2x16xf32>
    %325 = arith.index_cast %305 : i32 to index
    %c0_96 = arith.constant 0 : index
    %326 = vector.load %arg19[%325, %c0_96] : memref<16x16xf32, #tpu.memory_space<vmem>>, vector<2x16xf32>
    tpu.vector_store %arg19[%325, %c0_96], %324 {strides = array<i32>} : memref<16x16xf32, #tpu.memory_space<vmem>>, vector<2x16xf32>,
    %c5_i32_97 = arith.constant 5 : i32
    %c2_i32_98 = arith.constant 2 : i32
    %327 = arith.muli %c5_i32_97, %c2_i32_98 : i32
    %328 = tpu.assume_multiple %327, 2 : i32
    %329 = arith.index_cast %328 : i32 to index
    %c0_99 = arith.constant 0 : index
    %330 = vector.load %arg18[%329, %c0_99] : memref<16x64xf32, #tpu.memory_space<vmem>>, vector<2x64xf32>
    %cst_100 = arith.constant dense<0.000000e+00> : vector<2x64xf32>
    %331 = tpu.matmul %324, %210, %cst_100 {dimension_numbers = #tpu.dot_dimension_numbers<[1], [0], [0], [1], [0, 0, 1, 1], [], []>} : vector<2x16xf32>, vector<16x64xf32>, vector<2x64xf32> -> vector<2x64xf32>
    %332 = arith.addf %330, %331 : vector<2x64xf32>
    %333 = arith.negf %332 : vector<2x64xf32>
    %334 = math.exp %333 : vector<2x64xf32>
    %cst_101 = arith.constant 1.000000e+00 : f32
    %335 = vector.broadcast %cst_101 : f32 to vector<2x64xf32>
    %336 = arith.addf %335, %334 : vector<2x64xf32>
    %337 = arith.divf %335, %336 : vector<2x64xf32>
    %338 = math.tanh %332 : vector<2x64xf32>
    %339 = vector.extract_strided_slice %337 {offsets = [0, 0], sizes = [2, 16], strides = [1, 1]} : vector<2x64xf32> to vector<2x16xf32>
    %340 = vector.extract_strided_slice %337 {offsets = [0, 16], sizes = [2, 16], strides = [1, 1]} : vector<2x64xf32> to vector<2x16xf32>
    %341 = vector.extract_strided_slice %338 {offsets = [0, 32], sizes = [2, 16], strides = [1, 1]} : vector<2x64xf32> to vector<2x16xf32>
    %342 = vector.extract_strided_slice %337 {offsets = [0, 48], sizes = [2, 16], strides = [1, 1]} : vector<2x64xf32> to vector<2x16xf32>
    %343 = arith.mulf %340, %322 : vector<2x16xf32>
    %344 = arith.mulf %339, %341 : vector<2x16xf32>
    %345 = arith.addf %343, %344 : vector<2x16xf32>
    %346 = math.tanh %345 : vector<2x16xf32>
    %347 = arith.mulf %342, %346 : vector<2x16xf32>
    %348 = arith.index_cast %328 : i32 to index
    %c0_102 = arith.constant 0 : index
    %349 = vector.load %arg19[%348, %c0_102] : memref<16x16xf32, #tpu.memory_space<vmem>>, vector<2x16xf32>
    tpu.vector_store %arg19[%348, %c0_102], %347 {strides = array<i32>} : memref<16x16xf32, #tpu.memory_space<vmem>>, vector<2x16xf32>,
    %c6_i32_103 = arith.constant 6 : i32
    %c2_i32_104 = arith.constant 2 : i32
    %350 = arith.muli %c6_i32_103, %c2_i32_104 : i32
    %351 = tpu.assume_multiple %350, 2 : i32
    %352 = arith.index_cast %351 : i32 to index
    %c0_105 = arith.constant 0 : index
    %353 = vector.load %arg18[%352, %c0_105] : memref<16x64xf32, #tpu.memory_space<vmem>>, vector<2x64xf32>
    %cst_106 = arith.constant dense<0.000000e+00> : vector<2x64xf32>
    %354 = tpu.matmul %347, %210, %cst_106 {dimension_numbers = #tpu.dot_dimension_numbers<[1], [0], [0], [1], [0, 0, 1, 1], [], []>} : vector<2x16xf32>, vector<16x64xf32>, vector<2x64xf32> -> vector<2x64xf32>
    %355 = arith.addf %353, %354 : vector<2x64xf32>
    %356 = arith.negf %355 : vector<2x64xf32>
    %357 = math.exp %356 : vector<2x64xf32>
    %cst_107 = arith.constant 1.000000e+00 : f32
    %358 = vector.broadcast %cst_107 : f32 to vector<2x64xf32>
    %359 = arith.addf %358, %357 : vector<2x64xf32>
    %360 = arith.divf %358, %359 : vector<2x64xf32>
    %361 = math.tanh %355 : vector<2x64xf32>
    %362 = vector.extract_strided_slice %360 {offsets = [0, 0], sizes = [2, 16], strides = [1, 1]} : vector<2x64xf32> to vector<2x16xf32>
    %363 = vector.extract_strided_slice %360 {offsets = [0, 16], sizes = [2, 16], strides = [1, 1]} : vector<2x64xf32> to vector<2x16xf32>
    %364 = vector.extract_strided_slice %361 {offsets = [0, 32], sizes = [2, 16], strides = [1, 1]} : vector<2x64xf32> to vector<2x16xf32>
    %365 = vector.extract_strided_slice %360 {offsets = [0, 48], sizes = [2, 16], strides = [1, 1]} : vector<2x64xf32> to vector<2x16xf32>
    %366 = arith.mulf %363, %345 : vector<2x16xf32>
    %367 = arith.mulf %362, %364 : vector<2x16xf32>
    %368 = arith.addf %366, %367 : vector<2x16xf32>
    %369 = math.tanh %368 : vector<2x16xf32>
    %370 = arith.mulf %365, %369 : vector<2x16xf32>
    %371 = arith.index_cast %351 : i32 to index
    %c0_108 = arith.constant 0 : index
    %372 = vector.load %arg19[%371, %c0_108] : memref<16x16xf32, #tpu.memory_space<vmem>>, vector<2x16xf32>
    tpu.vector_store %arg19[%371, %c0_108], %370 {strides = array<i32>} : memref<16x16xf32, #tpu.memory_space<vmem>>, vector<2x16xf32>,
    %c7_i32_109 = arith.constant 7 : i32
    %c2_i32_110 = arith.constant 2 : i32
    %373 = arith.muli %c7_i32_109, %c2_i32_110 : i32
    %374 = tpu.assume_multiple %373, 2 : i32
    %375 = arith.index_cast %374 : i32 to index
    %c0_111 = arith.constant 0 : index
    %376 = vector.load %arg18[%375, %c0_111] : memref<16x64xf32, #tpu.memory_space<vmem>>, vector<2x64xf32>
    %cst_112 = arith.constant dense<0.000000e+00> : vector<2x64xf32>
    %377 = tpu.matmul %370, %210, %cst_112 {dimension_numbers = #tpu.dot_dimension_numbers<[1], [0], [0], [1], [0, 0, 1, 1], [], []>} : vector<2x16xf32>, vector<16x64xf32>, vector<2x64xf32> -> vector<2x64xf32>
    %378 = arith.addf %376, %377 : vector<2x64xf32>
    %379 = arith.negf %378 : vector<2x64xf32>
    %380 = math.exp %379 : vector<2x64xf32>
    %cst_113 = arith.constant 1.000000e+00 : f32
    %381 = vector.broadcast %cst_113 : f32 to vector<2x64xf32>
    %382 = arith.addf %381, %380 : vector<2x64xf32>
    %383 = arith.divf %381, %382 : vector<2x64xf32>
    %384 = math.tanh %378 : vector<2x64xf32>
    %385 = vector.extract_strided_slice %383 {offsets = [0, 0], sizes = [2, 16], strides = [1, 1]} : vector<2x64xf32> to vector<2x16xf32>
    %386 = vector.extract_strided_slice %383 {offsets = [0, 16], sizes = [2, 16], strides = [1, 1]} : vector<2x64xf32> to vector<2x16xf32>
    %387 = vector.extract_strided_slice %384 {offsets = [0, 32], sizes = [2, 16], strides = [1, 1]} : vector<2x64xf32> to vector<2x16xf32>
    %388 = vector.extract_strided_slice %383 {offsets = [0, 48], sizes = [2, 16], strides = [1, 1]} : vector<2x64xf32> to vector<2x16xf32>
    %389 = arith.mulf %386, %368 : vector<2x16xf32>
    %390 = arith.mulf %385, %387 : vector<2x16xf32>
    %391 = arith.addf %389, %390 : vector<2x16xf32>
    %392 = math.tanh %391 : vector<2x16xf32>
    %393 = arith.mulf %388, %392 : vector<2x16xf32>
    %394 = arith.index_cast %374 : i32 to index
    %c0_114 = arith.constant 0 : index
    %395 = vector.load %arg19[%394, %c0_114] : memref<16x16xf32, #tpu.memory_space<vmem>>, vector<2x16xf32>
    tpu.vector_store %arg19[%394, %c0_114], %393 {strides = array<i32>} : memref<16x16xf32, #tpu.memory_space<vmem>>, vector<2x16xf32>,
    %c8_i32_115 = arith.constant 8 : i32
    %c0_116 = arith.constant 0 : index
    %c0_117 = arith.constant 0 : index
    %396 = vector.load %arg19[%c0_116, %c0_117] : memref<16x16xf32, #tpu.memory_space<vmem>>, vector<16x16xf32>
    %397 = arith.truncf %396 : vector<16x16xf32> to vector<16x16xbf16>
    %c0_118 = arith.constant 0 : index
    %c0_119 = arith.constant 0 : index
    %398 = vector.load %arg10[%c0_118, %c0_119] : memref<16x64xbf16, #tpu.memory_space<vmem>>, vector<16x64xbf16>
    %cst_120 = arith.constant dense<0.000000e+00> : vector<16x64xf32>
    %399 = tpu.matmul %397, %398, %cst_120 {dimension_numbers = #tpu.dot_dimension_numbers<[1], [0], [0], [1], [0, 0, 1, 1], [], []>} : vector<16x16xbf16>, vector<16x64xbf16>, vector<16x64xf32> -> vector<16x64xf32>
    %c0_121 = arith.constant 0 : index
    %c0_122 = arith.constant 0 : index
    %400 = vector.load %arg12[%c0_121, %c0_122] : memref<1x64xf32, #tpu.memory_space<vmem>>, vector<1x64xf32>
    %401 = vector.broadcast %400 : vector<1x64xf32> to vector<16x64xf32>
    %402 = arith.addf %399, %401 : vector<16x64xf32>
    %c0_123 = arith.constant 0 : index
    %c0_124 = arith.constant 0 : index
    %403 = vector.load %arg20[%c0_123, %c0_124] : memref<16x64xf32, #tpu.memory_space<vmem>>, vector<16x64xf32>
    tpu.vector_store %arg20[%c0_123, %c0_124], %402 {strides = array<i32>} : memref<16x64xf32, #tpu.memory_space<vmem>>, vector<16x64xf32>,
    %c0_125 = arith.constant 0 : index
    %c0_126 = arith.constant 0 : index
    %404 = vector.load %arg11[%c0_125, %c0_126] : memref<16x64xf32, #tpu.memory_space<vmem>>, vector<16x64xf32>
    %cst_127 = arith.constant 0.000000e+00 : f32
    %405 = vector.broadcast %cst_127 : f32 to vector<2x16xf32>
    %c0_i32_128 = arith.constant 0 : i32
    %c2_i32_129 = arith.constant 2 : i32
    %406 = arith.muli %c0_i32_128, %c2_i32_129 : i32
    %407 = tpu.assume_multiple %406, 2 : i32
    %408 = arith.index_cast %407 : i32 to index
    %c0_130 = arith.constant 0 : index
    %409 = vector.load %arg20[%408, %c0_130] : memref<16x64xf32, #tpu.memory_space<vmem>>, vector<2x64xf32>
    %cst_131 = arith.constant dense<0.000000e+00> : vector<2x64xf32>
    %410 = tpu.matmul %405, %404, %cst_131 {dimension_numbers = #tpu.dot_dimension_numbers<[1], [0], [0], [1], [0, 0, 1, 1], [], []>} : vector<2x16xf32>, vector<16x64xf32>, vector<2x64xf32> -> vector<2x64xf32>
    %411 = arith.addf %409, %410 : vector<2x64xf32>
    %412 = arith.negf %411 : vector<2x64xf32>
    %413 = math.exp %412 : vector<2x64xf32>
    %cst_132 = arith.constant 1.000000e+00 : f32
    %414 = vector.broadcast %cst_132 : f32 to vector<2x64xf32>
    %415 = arith.addf %414, %413 : vector<2x64xf32>
    %416 = arith.divf %414, %415 : vector<2x64xf32>
    %417 = math.tanh %411 : vector<2x64xf32>
    %418 = vector.extract_strided_slice %416 {offsets = [0, 0], sizes = [2, 16], strides = [1, 1]} : vector<2x64xf32> to vector<2x16xf32>
    %419 = vector.extract_strided_slice %416 {offsets = [0, 16], sizes = [2, 16], strides = [1, 1]} : vector<2x64xf32> to vector<2x16xf32>
    %420 = vector.extract_strided_slice %417 {offsets = [0, 32], sizes = [2, 16], strides = [1, 1]} : vector<2x64xf32> to vector<2x16xf32>
    %421 = vector.extract_strided_slice %416 {offsets = [0, 48], sizes = [2, 16], strides = [1, 1]} : vector<2x64xf32> to vector<2x16xf32>
    %422 = arith.mulf %419, %405 : vector<2x16xf32>
    %423 = arith.mulf %418, %420 : vector<2x16xf32>
    %424 = arith.addf %422, %423 : vector<2x16xf32>
    %425 = math.tanh %424 : vector<2x16xf32>
    %426 = arith.mulf %421, %425 : vector<2x16xf32>
    %427 = arith.index_cast %407 : i32 to index
    %c0_133 = arith.constant 0 : index
    %428 = vector.load %arg21[%427, %c0_133] : memref<16x16xf32, #tpu.memory_space<vmem>>, vector<2x16xf32>
    tpu.vector_store %arg21[%427, %c0_133], %426 {strides = array<i32>} : memref<16x16xf32, #tpu.memory_space<vmem>>, vector<2x16xf32>,
    %c1_i32_134 = arith.constant 1 : i32
    %c2_i32_135 = arith.constant 2 : i32
    %429 = arith.muli %c1_i32_134, %c2_i32_135 : i32
    %430 = tpu.assume_multiple %429, 2 : i32
    %431 = arith.index_cast %430 : i32 to index
    %c0_136 = arith.constant 0 : index
    %432 = vector.load %arg20[%431, %c0_136] : memref<16x64xf32, #tpu.memory_space<vmem>>, vector<2x64xf32>
    %cst_137 = arith.constant dense<0.000000e+00> : vector<2x64xf32>
    %433 = tpu.matmul %426, %404, %cst_137 {dimension_numbers = #tpu.dot_dimension_numbers<[1], [0], [0], [1], [0, 0, 1, 1], [], []>} : vector<2x16xf32>, vector<16x64xf32>, vector<2x64xf32> -> vector<2x64xf32>
    %434 = arith.addf %432, %433 : vector<2x64xf32>
    %435 = arith.negf %434 : vector<2x64xf32>
    %436 = math.exp %435 : vector<2x64xf32>
    %cst_138 = arith.constant 1.000000e+00 : f32
    %437 = vector.broadcast %cst_138 : f32 to vector<2x64xf32>
    %438 = arith.addf %437, %436 : vector<2x64xf32>
    %439 = arith.divf %437, %438 : vector<2x64xf32>
    %440 = math.tanh %434 : vector<2x64xf32>
    %441 = vector.extract_strided_slice %439 {offsets = [0, 0], sizes = [2, 16], strides = [1, 1]} : vector<2x64xf32> to vector<2x16xf32>
    %442 = vector.extract_strided_slice %439 {offsets = [0, 16], sizes = [2, 16], strides = [1, 1]} : vector<2x64xf32> to vector<2x16xf32>
    %443 = vector.extract_strided_slice %440 {offsets = [0, 32], sizes = [2, 16], strides = [1, 1]} : vector<2x64xf32> to vector<2x16xf32>
    %444 = vector.extract_strided_slice %439 {offsets = [0, 48], sizes = [2, 16], strides = [1, 1]} : vector<2x64xf32> to vector<2x16xf32>
    %445 = arith.mulf %442, %424 : vector<2x16xf32>
    %446 = arith.mulf %441, %443 : vector<2x16xf32>
    %447 = arith.addf %445, %446 : vector<2x16xf32>
    %448 = math.tanh %447 : vector<2x16xf32>
    %449 = arith.mulf %444, %448 : vector<2x16xf32>
    %450 = arith.index_cast %430 : i32 to index
    %c0_139 = arith.constant 0 : index
    %451 = vector.load %arg21[%450, %c0_139] : memref<16x16xf32, #tpu.memory_space<vmem>>, vector<2x16xf32>
    tpu.vector_store %arg21[%450, %c0_139], %449 {strides = array<i32>} : memref<16x16xf32, #tpu.memory_space<vmem>>, vector<2x16xf32>,
    %c2_i32_140 = arith.constant 2 : i32
    %c2_i32_141 = arith.constant 2 : i32
    %452 = arith.muli %c2_i32_140, %c2_i32_141 : i32
    %453 = tpu.assume_multiple %452, 2 : i32
    %454 = arith.index_cast %453 : i32 to index
    %c0_142 = arith.constant 0 : index
    %455 = vector.load %arg20[%454, %c0_142] : memref<16x64xf32, #tpu.memory_space<vmem>>, vector<2x64xf32>
    %cst_143 = arith.constant dense<0.000000e+00> : vector<2x64xf32>
    %456 = tpu.matmul %449, %404, %cst_143 {dimension_numbers = #tpu.dot_dimension_numbers<[1], [0], [0], [1], [0, 0, 1, 1], [], []>} : vector<2x16xf32>, vector<16x64xf32>, vector<2x64xf32> -> vector<2x64xf32>
    %457 = arith.addf %455, %456 : vector<2x64xf32>
    %458 = arith.negf %457 : vector<2x64xf32>
    %459 = math.exp %458 : vector<2x64xf32>
    %cst_144 = arith.constant 1.000000e+00 : f32
    %460 = vector.broadcast %cst_144 : f32 to vector<2x64xf32>
    %461 = arith.addf %460, %459 : vector<2x64xf32>
    %462 = arith.divf %460, %461 : vector<2x64xf32>
    %463 = math.tanh %457 : vector<2x64xf32>
    %464 = vector.extract_strided_slice %462 {offsets = [0, 0], sizes = [2, 16], strides = [1, 1]} : vector<2x64xf32> to vector<2x16xf32>
    %465 = vector.extract_strided_slice %462 {offsets = [0, 16], sizes = [2, 16], strides = [1, 1]} : vector<2x64xf32> to vector<2x16xf32>
    %466 = vector.extract_strided_slice %463 {offsets = [0, 32], sizes = [2, 16], strides = [1, 1]} : vector<2x64xf32> to vector<2x16xf32>
    %467 = vector.extract_strided_slice %462 {offsets = [0, 48], sizes = [2, 16], strides = [1, 1]} : vector<2x64xf32> to vector<2x16xf32>
    %468 = arith.mulf %465, %447 : vector<2x16xf32>
    %469 = arith.mulf %464, %466 : vector<2x16xf32>
    %470 = arith.addf %468, %469 : vector<2x16xf32>
    %471 = math.tanh %470 : vector<2x16xf32>
    %472 = arith.mulf %467, %471 : vector<2x16xf32>
    %473 = arith.index_cast %453 : i32 to index
    %c0_145 = arith.constant 0 : index
    %474 = vector.load %arg21[%473, %c0_145] : memref<16x16xf32, #tpu.memory_space<vmem>>, vector<2x16xf32>
    tpu.vector_store %arg21[%473, %c0_145], %472 {strides = array<i32>} : memref<16x16xf32, #tpu.memory_space<vmem>>, vector<2x16xf32>,
    %c3_i32_146 = arith.constant 3 : i32
    %c2_i32_147 = arith.constant 2 : i32
    %475 = arith.muli %c3_i32_146, %c2_i32_147 : i32
    %476 = tpu.assume_multiple %475, 2 : i32
    %477 = arith.index_cast %476 : i32 to index
    %c0_148 = arith.constant 0 : index
    %478 = vector.load %arg20[%477, %c0_148] : memref<16x64xf32, #tpu.memory_space<vmem>>, vector<2x64xf32>
    %cst_149 = arith.constant dense<0.000000e+00> : vector<2x64xf32>
    %479 = tpu.matmul %472, %404, %cst_149 {dimension_numbers = #tpu.dot_dimension_numbers<[1], [0], [0], [1], [0, 0, 1, 1], [], []>} : vector<2x16xf32>, vector<16x64xf32>, vector<2x64xf32> -> vector<2x64xf32>
    %480 = arith.addf %478, %479 : vector<2x64xf32>
    %481 = arith.negf %480 : vector<2x64xf32>
    %482 = math.exp %481 : vector<2x64xf32>
    %cst_150 = arith.constant 1.000000e+00 : f32
    %483 = vector.broadcast %cst_150 : f32 to vector<2x64xf32>
    %484 = arith.addf %483, %482 : vector<2x64xf32>
    %485 = arith.divf %483, %484 : vector<2x64xf32>
    %486 = math.tanh %480 : vector<2x64xf32>
    %487 = vector.extract_strided_slice %485 {offsets = [0, 0], sizes = [2, 16], strides = [1, 1]} : vector<2x64xf32> to vector<2x16xf32>
    %488 = vector.extract_strided_slice %485 {offsets = [0, 16], sizes = [2, 16], strides = [1, 1]} : vector<2x64xf32> to vector<2x16xf32>
    %489 = vector.extract_strided_slice %486 {offsets = [0, 32], sizes = [2, 16], strides = [1, 1]} : vector<2x64xf32> to vector<2x16xf32>
    %490 = vector.extract_strided_slice %485 {offsets = [0, 48], sizes = [2, 16], strides = [1, 1]} : vector<2x64xf32> to vector<2x16xf32>
    %491 = arith.mulf %488, %470 : vector<2x16xf32>
    %492 = arith.mulf %487, %489 : vector<2x16xf32>
    %493 = arith.addf %491, %492 : vector<2x16xf32>
    %494 = math.tanh %493 : vector<2x16xf32>
    %495 = arith.mulf %490, %494 : vector<2x16xf32>
    %496 = arith.index_cast %476 : i32 to index
    %c0_151 = arith.constant 0 : index
    %497 = vector.load %arg21[%496, %c0_151] : memref<16x16xf32, #tpu.memory_space<vmem>>, vector<2x16xf32>
    tpu.vector_store %arg21[%496, %c0_151], %495 {strides = array<i32>} : memref<16x16xf32, #tpu.memory_space<vmem>>, vector<2x16xf32>,
    %c4_i32_152 = arith.constant 4 : i32
    %c2_i32_153 = arith.constant 2 : i32
    %498 = arith.muli %c4_i32_152, %c2_i32_153 : i32
    %499 = tpu.assume_multiple %498, 2 : i32
    %500 = arith.index_cast %499 : i32 to index
    %c0_154 = arith.constant 0 : index
    %501 = vector.load %arg20[%500, %c0_154] : memref<16x64xf32, #tpu.memory_space<vmem>>, vector<2x64xf32>
    %cst_155 = arith.constant dense<0.000000e+00> : vector<2x64xf32>
    %502 = tpu.matmul %495, %404, %cst_155 {dimension_numbers = #tpu.dot_dimension_numbers<[1], [0], [0], [1], [0, 0, 1, 1], [], []>} : vector<2x16xf32>, vector<16x64xf32>, vector<2x64xf32> -> vector<2x64xf32>
    %503 = arith.addf %501, %502 : vector<2x64xf32>
    %504 = arith.negf %503 : vector<2x64xf32>
    %505 = math.exp %504 : vector<2x64xf32>
    %cst_156 = arith.constant 1.000000e+00 : f32
    %506 = vector.broadcast %cst_156 : f32 to vector<2x64xf32>
    %507 = arith.addf %506, %505 : vector<2x64xf32>
    %508 = arith.divf %506, %507 : vector<2x64xf32>
    %509 = math.tanh %503 : vector<2x64xf32>
    %510 = vector.extract_strided_slice %508 {offsets = [0, 0], sizes = [2, 16], strides = [1, 1]} : vector<2x64xf32> to vector<2x16xf32>
    %511 = vector.extract_strided_slice %508 {offsets = [0, 16], sizes = [2, 16], strides = [1, 1]} : vector<2x64xf32> to vector<2x16xf32>
    %512 = vector.extract_strided_slice %509 {offsets = [0, 32], sizes = [2, 16], strides = [1, 1]} : vector<2x64xf32> to vector<2x16xf32>
    %513 = vector.extract_strided_slice %508 {offsets = [0, 48], sizes = [2, 16], strides = [1, 1]} : vector<2x64xf32> to vector<2x16xf32>
    %514 = arith.mulf %511, %493 : vector<2x16xf32>
    %515 = arith.mulf %510, %512 : vector<2x16xf32>
    %516 = arith.addf %514, %515 : vector<2x16xf32>
    %517 = math.tanh %516 : vector<2x16xf32>
    %518 = arith.mulf %513, %517 : vector<2x16xf32>
    %519 = arith.index_cast %499 : i32 to index
    %c0_157 = arith.constant 0 : index
    %520 = vector.load %arg21[%519, %c0_157] : memref<16x16xf32, #tpu.memory_space<vmem>>, vector<2x16xf32>
    tpu.vector_store %arg21[%519, %c0_157], %518 {strides = array<i32>} : memref<16x16xf32, #tpu.memory_space<vmem>>, vector<2x16xf32>,
    %c5_i32_158 = arith.constant 5 : i32
    %c2_i32_159 = arith.constant 2 : i32
    %521 = arith.muli %c5_i32_158, %c2_i32_159 : i32
    %522 = tpu.assume_multiple %521, 2 : i32
    %523 = arith.index_cast %522 : i32 to index
    %c0_160 = arith.constant 0 : index
    %524 = vector.load %arg20[%523, %c0_160] : memref<16x64xf32, #tpu.memory_space<vmem>>, vector<2x64xf32>
    %cst_161 = arith.constant dense<0.000000e+00> : vector<2x64xf32>
    %525 = tpu.matmul %518, %404, %cst_161 {dimension_numbers = #tpu.dot_dimension_numbers<[1], [0], [0], [1], [0, 0, 1, 1], [], []>} : vector<2x16xf32>, vector<16x64xf32>, vector<2x64xf32> -> vector<2x64xf32>
    %526 = arith.addf %524, %525 : vector<2x64xf32>
    %527 = arith.negf %526 : vector<2x64xf32>
    %528 = math.exp %527 : vector<2x64xf32>
    %cst_162 = arith.constant 1.000000e+00 : f32
    %529 = vector.broadcast %cst_162 : f32 to vector<2x64xf32>
    %530 = arith.addf %529, %528 : vector<2x64xf32>
    %531 = arith.divf %529, %530 : vector<2x64xf32>
    %532 = math.tanh %526 : vector<2x64xf32>
    %533 = vector.extract_strided_slice %531 {offsets = [0, 0], sizes = [2, 16], strides = [1, 1]} : vector<2x64xf32> to vector<2x16xf32>
    %534 = vector.extract_strided_slice %531 {offsets = [0, 16], sizes = [2, 16], strides = [1, 1]} : vector<2x64xf32> to vector<2x16xf32>
    %535 = vector.extract_strided_slice %532 {offsets = [0, 32], sizes = [2, 16], strides = [1, 1]} : vector<2x64xf32> to vector<2x16xf32>
    %536 = vector.extract_strided_slice %531 {offsets = [0, 48], sizes = [2, 16], strides = [1, 1]} : vector<2x64xf32> to vector<2x16xf32>
    %537 = arith.mulf %534, %516 : vector<2x16xf32>
    %538 = arith.mulf %533, %535 : vector<2x16xf32>
    %539 = arith.addf %537, %538 : vector<2x16xf32>
    %540 = math.tanh %539 : vector<2x16xf32>
    %541 = arith.mulf %536, %540 : vector<2x16xf32>
    %542 = arith.index_cast %522 : i32 to index
    %c0_163 = arith.constant 0 : index
    %543 = vector.load %arg21[%542, %c0_163] : memref<16x16xf32, #tpu.memory_space<vmem>>, vector<2x16xf32>
    tpu.vector_store %arg21[%542, %c0_163], %541 {strides = array<i32>} : memref<16x16xf32, #tpu.memory_space<vmem>>, vector<2x16xf32>,
    %c6_i32_164 = arith.constant 6 : i32
    %c2_i32_165 = arith.constant 2 : i32
    %544 = arith.muli %c6_i32_164, %c2_i32_165 : i32
    %545 = tpu.assume_multiple %544, 2 : i32
    %546 = arith.index_cast %545 : i32 to index
    %c0_166 = arith.constant 0 : index
    %547 = vector.load %arg20[%546, %c0_166] : memref<16x64xf32, #tpu.memory_space<vmem>>, vector<2x64xf32>
    %cst_167 = arith.constant dense<0.000000e+00> : vector<2x64xf32>
    %548 = tpu.matmul %541, %404, %cst_167 {dimension_numbers = #tpu.dot_dimension_numbers<[1], [0], [0], [1], [0, 0, 1, 1], [], []>} : vector<2x16xf32>, vector<16x64xf32>, vector<2x64xf32> -> vector<2x64xf32>
    %549 = arith.addf %547, %548 : vector<2x64xf32>
    %550 = arith.negf %549 : vector<2x64xf32>
    %551 = math.exp %550 : vector<2x64xf32>
    %cst_168 = arith.constant 1.000000e+00 : f32
    %552 = vector.broadcast %cst_168 : f32 to vector<2x64xf32>
    %553 = arith.addf %552, %551 : vector<2x64xf32>
    %554 = arith.divf %552, %553 : vector<2x64xf32>
    %555 = math.tanh %549 : vector<2x64xf32>
    %556 = vector.extract_strided_slice %554 {offsets = [0, 0], sizes = [2, 16], strides = [1, 1]} : vector<2x64xf32> to vector<2x16xf32>
    %557 = vector.extract_strided_slice %554 {offsets = [0, 16], sizes = [2, 16], strides = [1, 1]} : vector<2x64xf32> to vector<2x16xf32>
    %558 = vector.extract_strided_slice %555 {offsets = [0, 32], sizes = [2, 16], strides = [1, 1]} : vector<2x64xf32> to vector<2x16xf32>
    %559 = vector.extract_strided_slice %554 {offsets = [0, 48], sizes = [2, 16], strides = [1, 1]} : vector<2x64xf32> to vector<2x16xf32>
    %560 = arith.mulf %557, %539 : vector<2x16xf32>
    %561 = arith.mulf %556, %558 : vector<2x16xf32>
    %562 = arith.addf %560, %561 : vector<2x16xf32>
    %563 = math.tanh %562 : vector<2x16xf32>
    %564 = arith.mulf %559, %563 : vector<2x16xf32>
    %565 = arith.index_cast %545 : i32 to index
    %c0_169 = arith.constant 0 : index
    %566 = vector.load %arg21[%565, %c0_169] : memref<16x16xf32, #tpu.memory_space<vmem>>, vector<2x16xf32>
    tpu.vector_store %arg21[%565, %c0_169], %564 {strides = array<i32>} : memref<16x16xf32, #tpu.memory_space<vmem>>, vector<2x16xf32>,
    %c7_i32_170 = arith.constant 7 : i32
    %c2_i32_171 = arith.constant 2 : i32
    %567 = arith.muli %c7_i32_170, %c2_i32_171 : i32
    %568 = tpu.assume_multiple %567, 2 : i32
    %569 = arith.index_cast %568 : i32 to index
    %c0_172 = arith.constant 0 : index
    %570 = vector.load %arg20[%569, %c0_172] : memref<16x64xf32, #tpu.memory_space<vmem>>, vector<2x64xf32>
    %cst_173 = arith.constant dense<0.000000e+00> : vector<2x64xf32>
    %571 = tpu.matmul %564, %404, %cst_173 {dimension_numbers = #tpu.dot_dimension_numbers<[1], [0], [0], [1], [0, 0, 1, 1], [], []>} : vector<2x16xf32>, vector<16x64xf32>, vector<2x64xf32> -> vector<2x64xf32>
    %572 = arith.addf %570, %571 : vector<2x64xf32>
    %573 = arith.negf %572 : vector<2x64xf32>
    %574 = math.exp %573 : vector<2x64xf32>
    %cst_174 = arith.constant 1.000000e+00 : f32
    %575 = vector.broadcast %cst_174 : f32 to vector<2x64xf32>
    %576 = arith.addf %575, %574 : vector<2x64xf32>
    %577 = arith.divf %575, %576 : vector<2x64xf32>
    %578 = math.tanh %572 : vector<2x64xf32>
    %579 = vector.extract_strided_slice %577 {offsets = [0, 0], sizes = [2, 16], strides = [1, 1]} : vector<2x64xf32> to vector<2x16xf32>
    %580 = vector.extract_strided_slice %577 {offsets = [0, 16], sizes = [2, 16], strides = [1, 1]} : vector<2x64xf32> to vector<2x16xf32>
    %581 = vector.extract_strided_slice %578 {offsets = [0, 32], sizes = [2, 16], strides = [1, 1]} : vector<2x64xf32> to vector<2x16xf32>
    %582 = vector.extract_strided_slice %577 {offsets = [0, 48], sizes = [2, 16], strides = [1, 1]} : vector<2x64xf32> to vector<2x16xf32>
    %583 = arith.mulf %580, %562 : vector<2x16xf32>
    %584 = arith.mulf %579, %581 : vector<2x16xf32>
    %585 = arith.addf %583, %584 : vector<2x16xf32>
    %586 = math.tanh %585 : vector<2x16xf32>
    %587 = arith.mulf %582, %586 : vector<2x16xf32>
    %588 = arith.index_cast %568 : i32 to index
    %c0_175 = arith.constant 0 : index
    %589 = vector.load %arg21[%588, %c0_175] : memref<16x16xf32, #tpu.memory_space<vmem>>, vector<2x16xf32>
    tpu.vector_store %arg21[%588, %c0_175], %587 {strides = array<i32>} : memref<16x16xf32, #tpu.memory_space<vmem>>, vector<2x16xf32>,
    %c8_i32_176 = arith.constant 8 : i32
    %c0_177 = arith.constant 0 : index
    %c0_178 = arith.constant 0 : index
    %590 = vector.load %arg13[%c0_177, %c0_178] : memref<1x16xf32, #tpu.memory_space<vmem>>, vector<1x16xf32>
    %c0_179 = arith.constant 0 : index
    %c0_180 = arith.constant 0 : index
    %591 = vector.load %arg21[%c0_179, %c0_180] : memref<16x16xf32, #tpu.memory_space<vmem>>, vector<16x16xf32>
    %cst_181 = arith.constant dense<0.000000e+00> : vector<1x16xf32>
    %592 = tpu.matmul %590, %591, %cst_181 {dimension_numbers = #tpu.dot_dimension_numbers<[1], [1], [0], [0], [0, 0, 1, 0], [], []>} : vector<1x16xf32>, vector<16x16xf32>, vector<1x16xf32> -> vector<1x16xf32>
    %c0_182 = arith.constant 0 : index
    %c0_183 = arith.constant 0 : index
    %593 = vector.load %arg14[%c0_182, %c0_183] : memref<1x1xf32, #tpu.memory_space<vmem>>, vector<1x1xf32>
    %594 = vector.broadcast %593 : vector<1x1xf32> to vector<1x16xf32>
    %595 = arith.addf %592, %594 : vector<1x16xf32>
    %c0_184 = arith.constant 0 : index
    %c0_185 = arith.constant 0 : index
    %c0_186 = arith.constant 0 : index
    %596 = vector.load %arg15[%c0_184, %c0_185, %c0_186] : memref<1x1x16xf32, #tpu.memory_space<vmem>>, vector<1x1x16xf32>
    %597 = vector.shape_cast %596 : vector<1x1x16xf32> to vector<1x16xf32>
    %598 = vector.shape_cast %595 : vector<1x16xf32> to vector<1x1x16xf32>
    tpu.vector_store %arg15[%c0_184, %c0_185, %c0_186], %598 {strides = array<i32>} : memref<1x1x16xf32, #tpu.memory_space<vmem>>, vector<1x1x16xf32>,
    return
  }
  func.func @transform_0(%arg0: i32) -> (i32, i32, i32) {
    %c0_i32 = arith.constant 0 : i32
    %c0_i32_0 = arith.constant 0 : i32
    %c0_i32_1 = arith.constant 0 : i32
    return %arg0, %c0_i32, %c0_i32_0 : i32, i32, i32
  }
  func.func @transform_1(%arg0: i32) -> (i32, i32) {
    %c0_i32 = arith.constant 0 : i32
    %c0_i32_0 = arith.constant 0 : i32
    %c0_i32_1 = arith.constant 0 : i32
    return %c0_i32, %c0_i32_0 : i32, i32
  }
  func.func @transform_2(%arg0: i32) -> (i32, i32) {
    %c0_i32 = arith.constant 0 : i32
    %c0_i32_0 = arith.constant 0 : i32
    %c0_i32_1 = arith.constant 0 : i32
    return %c0_i32, %c0_i32_0 : i32, i32
  }
  func.func @transform_3(%arg0: i32) -> (i32, i32) {
    %c0_i32 = arith.constant 0 : i32
    %c0_i32_0 = arith.constant 0 : i32
    %c0_i32_1 = arith.constant 0 : i32
    return %c0_i32, %c0_i32_0 : i32, i32
  }
  func.func @transform_4(%arg0: i32) -> (i32, i32) {
    %c0_i32 = arith.constant 0 : i32
    %c0_i32_0 = arith.constant 0 : i32
    %c0_i32_1 = arith.constant 0 : i32
    return %c0_i32, %c0_i32_0 : i32, i32
  }
  func.func @transform_5(%arg0: i32) -> (i32, i32) {
    %c0_i32 = arith.constant 0 : i32
    %c0_i32_0 = arith.constant 0 : i32
    %c0_i32_1 = arith.constant 0 : i32
    return %c0_i32, %c0_i32_0 : i32, i32
  }
  func.func @transform_6(%arg0: i32) -> (i32, i32) {
    %c0_i32 = arith.constant 0 : i32
    %c0_i32_0 = arith.constant 0 : i32
    %c0_i32_1 = arith.constant 0 : i32
    return %c0_i32, %c0_i32_0 : i32, i32
  }
  func.func @transform_7(%arg0: i32) -> (i32, i32) {
    %c0_i32 = arith.constant 0 : i32
    %c0_i32_0 = arith.constant 0 : i32
    %c0_i32_1 = arith.constant 0 : i32
    return %c0_i32, %c0_i32_0 : i32, i32
  }
  func.func @transform_8(%arg0: i32) -> (i32, i32) {
    %c0_i32 = arith.constant 0 : i32
    %c0_i32_0 = arith.constant 0 : i32
    %c0_i32_1 = arith.constant 0 : i32
    return %c0_i32, %c0_i32_0 : i32, i32
  }
  func.func @transform_9(%arg0: i32) -> (i32, i32) {
    %c0_i32 = arith.constant 0 : i32
    %c0_i32_0 = arith.constant 0 : i32
    %c0_i32_1 = arith.constant 0 : i32
    return %c0_i32, %c0_i32_0 : i32, i32
  }
  func.func @transform_10(%arg0: i32) -> (i32, i32) {
    %c0_i32 = arith.constant 0 : i32
    %c0_i32_0 = arith.constant 0 : i32
    %c0_i32_1 = arith.constant 0 : i32
    return %c0_i32, %c0_i32_0 : i32, i32
  }
  func.func @transform_11(%arg0: i32) -> (i32, i32) {
    %c0_i32 = arith.constant 0 : i32
    %c0_i32_0 = arith.constant 0 : i32
    %c0_i32_1 = arith.constant 0 : i32
    return %c0_i32, %c0_i32_0 : i32, i32
  }
  func.func @transform_12(%arg0: i32) -> (i32, i32) {
    %c0_i32 = arith.constant 0 : i32
    %c0_i32_0 = arith.constant 0 : i32
    %c0_i32_1 = arith.constant 0 : i32
    return %c0_i32, %c0_i32_0 : i32, i32
  }
  func.func @transform_13(%arg0: i32) -> (i32, i32) {
    %c0_i32 = arith.constant 0 : i32
    %c0_i32_0 = arith.constant 0 : i32
    %c0_i32_1 = arith.constant 0 : i32
    return %c0_i32, %c0_i32_0 : i32, i32
  }
  func.func @transform_14(%arg0: i32) -> (i32, i32, i32) {
    %c0_i32 = arith.constant 0 : i32
    %c0_i32_0 = arith.constant 0 : i32
    %c0_i32_1 = arith.constant 0 : i32
    return %arg0, %c0_i32, %c0_i32_0 : i32, i32, i32
  }
}

</mosaic_0001>

<bundles_post_ra>
// kernel: model_forward.1
= control target key start
LH: loop header
LB: loop body
LE: loop exit
PB: predicated region body
PF: predicated region fallthrough
CT: control target
= control target key end

     0   :  { %s4073_s15 = smov 0   ;;  %s4512_s0 = inlined_call_operand.vmem [shape: bf16[2,16,32], index: 0, kind: input, shape index: {}]   ;;  %s4513_s1 = inlined_call_operand.vmem [shape: f32[1,32], index: 1, kind: input, shape index: {}]   ;;  %s4514_s2 = inlined_call_operand.vmem [shape: f32[1,32], index: 2, kind: input, shape index: {}]   ;;  %s4515_s3 = inlined_call_operand.vmem [shape: bf16[32,128], index: 3, kind: input, shape index: {}]   ;;  %s4516_s4 = inlined_call_operand.vmem [shape: f32[32,128], index: 4, kind: input, shape index: {}]   ;;  %s4517_s5 = inlined_call_operand.vmem [shape: f32[1,128], index: 5, kind: input, shape index: {}]   ;;  %s4518_s6 = inlined_call_operand.vmem [shape: bf16[32,64], index: 6, kind: input, shape index: {}]   ;;  %s4519_s7 = inlined_call_operand.vmem [shape: f32[16,64], index: 7, kind: input, shape index: {}]   ;;  %s4520_s8 = inlined_call_operand.vmem [shape: f32[1,64], index: 8, kind: input, shape index: {}]   ;;  %s4521_s9 = inlined_call_operand.vmem [shape: bf16[16,64], index: 9, kind: input, shape index: {}]   ;;  %s4522_s10 = inlined_call_operand.vmem [shape: f32[16,64], index: 10, kind: input, shape index: {}]   ;;  %s4523_s11 = inlined_call_operand.vmem [shape: f32[1,64], index: 11, kind: input, shape index: {}]   ;;  %s4524_s12 = inlined_call_operand.vmem [shape: f32[1,16], index: 12, kind: input, shape index: {}]   ;;  %s4525_s13 = inlined_call_operand.<no memory space> [shape: f32[1,1], index: 13, kind: input, shape index: {}]   ;;  %s4526_s14 = inlined_call_operand.vmem [shape: f32[2,1,16], index: 14, kind: output, shape index: {}]  }
   0x1   :  { %v19_v0 = vstv %s4525_s13 }
   0x2   :  { %20 = vst [vmem:[#allocation8] sm:$0x1] %v19_v0 }
   0x3 LB: > { %s3362_s16 = sadd.s32 4294967295, %s3985_s15   ;;  %p3366_p0 = scmp.ge.s32.totalorder %s3985_s15, 1  ;;  %s3985_s15 = sphi %s4073_s15, %s26_s15  }
   0x4   : > { %p414_p1 = scmp.lt.s32.totalorder %s3985_s15, 3 }
   0x6   : > { %p415_p2 = pnand %p3366_p0, %p414_p1 }
   0x7   : > { %p458_p3 = scmp.lt.s32.totalorder (!%p415_p2), %s3362_s16, 1  ;;  %s3989_s23 = smov (!%p415_p2), 64  }
   0x8   : > { %418 = sbr.rel (%p415_p2) target bundleno = 16823 (0x41b7), region = 76  ;;  %s3990_s24 = smov (!%p415_p2), 32  }
   0x9   : > { %s3991_s20 = smov (!%p415_p2), 96   ;;  %s3992_s21 = smov (!%p415_p2), 16  }
   0xa   : > { %s3993_s22 = smov (!%p415_p2), 80  }
   0xd   : > { %v3782_v1 = vld [vmem:[%s4515_s3 + $0x8] sm:$0xff]   ;;  %v3987_v2 = vmov 0.0   ;;  %v3783_v3 = vld [vmem:[%s4515_s3] sm:$0xff]   ;;  %vm3988_vm0 = vmmov 0   ;;  %v4095_v4 = vld [vmem:[%s4516_s4 + $0x18] sm:$0xff]  ;;  %s4528_s16 = smov (!%p458_p3, %s3362_s16), 1 }
   0xe   : > { %3536 = vmatprep.subr.bf16.mxu0 %v3987_v2  ;;  %3544 = vmatprep.subr.mxu1 %v3987_v2  ;;  %v4100_v5 = vld [vmem:[%s4516_s4 + $0x10] sm:$0xff]  ;;  %v4110_v6 = vld [vmem:[%s4516_s4 + $0x8] sm:$0xff]  ;;  %s3432_s26 = sshll.u32 %s4528_s16, 3  ;;  %v4122_v7 = vld [vmem:[%s4516_s4] sm:$0xff]  ;;  %vm513_vm1 = vcmask 261120   ;;  %vm667_vm2 = vcmask 254976  }
   0xf   : > { %3537 = vmatpush3.bf16.msra.mxu0 %v3782_v1  ;;  %3540 = vmatprep.mubr.msk.bf16.mxu0 %vm3988_vm0, %v3987_v2  ;;  %s462_s29 = scalar_lea.vmem %s4512_s0, %s3432_s26  ;;  %v3369_v9 = vld [vmem:[%s4513_s1] ss:$0 sm:$0xff]  ;;  %vm1474_vm3 = vcmask 523264   ;;  %vm1582_vm4 = vcmask 123904   ;;  %vm1480_vm5 = vcmask 130048   ;;  %vm3313_vm6 = vcmask 122880  }
  0x10   : > { %3538 = vmatprep.subr.bf16.mxu0 %v3987_v2  ;;  %3552 = vmatprep.mubr.msk.f32.mxu1 %vm3988_vm0, %v3987_v2  ;;  %v3434_v8 = vld [vmem:[%s462_s29] sm:$0xff]  }
  0x11   : > { %3545 = vmatpush3.msra.mxu1 %v4095_v4  ;;  %v3435_v10 = vunpack.c.l.bf16 %v3434_v8  ;;  %v3436_v11 = vunpack.c.h.bf16 %v3434_v8  ;;  %v3370_v12 = vld [vmem:[%s4514_s2] ss:$0 sm:$0xff] }
  0x12   : > { %3546 = vmatprep.subr.mxu1 %v3987_v2  ;;  %v3371_v20 = vld [vmem:[%s4517_s5] ss:$0 sm:$0xff] }
  0x13   : > { %3539 = vmatpush3.bf16.msra.mxu0 %v3783_v3  ;;  %3547 = vmatpush3.msra.mxu1 %v4100_v5  ;;  %v478_v13 = vmul.f32 %v3435_v10, %v3369_v9  ;;  %v479_v14 = vmul.f32 %v3436_v11, %v3369_v9 }
  0x14   : > { %3548 = vmatprep.subr.mxu1 %v3987_v2  ;;  %3555 = vmatprep.subr.mxu0 %v3987_v2 }
  0x15   : > { %3549 = vmatpush3.msra.mxu1 %v4110_v6  ;;  %v487_v15 = vadd.f32 %v3370_v12, %v478_v13  ;;  %v488_v16 = vadd.f32 %v3370_v12, %v479_v14 }
  0x16   : > { %3550 = vmatprep.subr.mxu1 %v3987_v2 }
  0x17   : > { %3551 = vmatpush3.msra.mxu1 %v4122_v7  ;;  %v489_v17 = vpack.c.bf16 %v488_v16, %v487_v15 }
  0x18   : > { %3553 = vmatmul.mubr.f32.vlgmr.msra.gmra.mxu1 %v3987_v2  ;;  %3566 = vmatprep.subr.mxu1 %v3987_v2 }
  0x19   : > { %3567 = vmatpush3.msra.mxu1 %v4095_v4  ;;  %3574 = vmatprep.mubr.msk.f32.mxu1 %vm3988_vm0, %v3987_v2 }
  0x1a   : > { %3568 = vmatprep.subr.mxu1 %v3987_v2  ;;  %3541 = vmatmul.mubr.msk.bf16.vlgmr.msra.gmra.mxu0 %vm513_vm1, %v489_v17 }
  0x1b   : > { %3569 = vmatpush3.msra.mxu1 %v4100_v5  ;;  %3556 = vmatpush3.msra.mxu0 %v4095_v4 }
  0x1c   : > { %3570 = vmatprep.subr.mxu1 %v3987_v2  ;;  %3563 = vmatprep.mubr.msk.f32.mxu0 %vm3988_vm0, %v3987_v2 }
  0x1d   : > { %3571 = vmatpush3.msra.mxu1 %v4110_v6  ;;  %3557 = vmatprep.subr.mxu0 %v3987_v2 }
  0x1e   : > { %3572 = vmatprep.subr.mxu1 %v3987_v2  ;;  %3558 = vmatpush3.msra.mxu0 %v4100_v5 }
  0x1f   : > { %3573 = vmatpush3.msra.mxu1 %v4122_v7  ;;  %3559 = vmatprep.subr.mxu0 %v3987_v2 }
  0x20   : > { %3588 = vmatprep.subr.mxu1 %v3987_v2  ;;  %3560 = vmatpush3.msra.mxu0 %v4110_v6 }
  0x21   : > { %3561 = vmatprep.subr.mxu0 %v3987_v2 }
  0x22   : > { %3562 = vmatpush3.msra.mxu0 %v4122_v7 }
  0x23   : > { %3577 = vmatprep.subr.mxu0 %v3987_v2 }
  0xd8   : > { %v634_v18 = vpop.f32.mrf.mxu1 }
  0xda   : > { %v3554_v19 = vpop.f32.mrf.mxu1  ;;  %v551_v21 = vpop.f32.mrf.mxu0 }
  0xdb   : > { %v552_v22 = vadd.f32 %v3371_v20, %v551_v21 }
  0xdc   : > { %v3542_v23 = vpop.f32.mrf.mxu0 }
  0xdd   : > { %558 = vst [vmem:[#allocation2] sm:$0xff] %v552_v22 }
  0xde   : > { %v554_v24 = vpop.f32.mrf.mxu0 }
  0xdf   : > { %v555_v25 = vadd.f32 %v3371_v20, %v554_v24 }
  0xe0   : > { %v3543_v26 = vpop.f32.mrf.mxu0 }
  0xe1   : > { %559 = vst [vmem:[#allocation2 + $0x8] sm:$0xff] %v555_v25 }
  0xe4   : > { %v564_v27 = vld [vmem:[#allocation2] sm:$0x3]  ;;  %v670_v43 = vld [vmem:[#allocation2 + $0x2] sm:$0x3]  ;;  %v775_v61 = vld [vmem:[#allocation2 + $0x4] sm:$0x3] }
  0xe5   : > { %v638_v28 = vadd.f32 %v634_v18, %v564_v27  ;;  %v880_v20 = vld [vmem:[#allocation2 + $0x6] sm:$0x3] }
  0xe7   : > { %3787 = vtanh.f32 %v638_v28  ;;  %v3375_v30 = vmul.f32 -1.442695, %v638_v28 }
  0xe9   : > { %3789 = vpow2.f32 %v3375_v30 }
  0xf4   : > { %v3788_v29 = vpop.eup %3787 }
  0xf5   : > { %648 = vrot.lane.b32.xlu0 %v3788_v29, %s3989_s23 }
  0xf6   : > { %v3790_v31 = vpop.eup %3789 }
  0xf7   : > { %v642_v32 = vadd.f32 1.0, %v3790_v31 }
  0xf9   : > { %3791 = vrcp.f32 %v642_v32 }
 0x106   : > { %v3792_v33 = vpop.eup %3791 }
 0x107   : > { %v646_v36 = vmul.f32 0.0, %v3792_v33 }
 0x167   : > { %v649_v34 = vpop.permute.xlu0 %648 }
 0x168   : > { %v651_v35 = vmul.f32 %v3792_v33, %v649_v34 }
 0x16a   : > { %653 = vrot.lane.b32.xlu0 %v651_v35, %s3990_s24 }
 0x1dc   : > { %v654_v37 = vpop.permute.xlu0 %653 }
 0x1dd   : > { %v656_v38 = vadd.f32 %v654_v37, %v646_v36 }
 0x1df   : > { %3793 = vtanh.f32 %v656_v38 }
 0x1ec   : > { %v3794_v39 = vpop.eup %3793 }
 0x1ed   : > { %659 = vrot.lane.b32.xlu1 %v3794_v39, %s3989_s23 }
 0x25f   : > { %v660_v40 = vpop.permute.xlu1 %659 }
 0x260   : > { %v662_v41 = vmul.f32 %v3792_v33, %v660_v40 }
 0x262   : > { %664 = vrot.lane.b32.xlu1 %v662_v41, %s3990_s24 }
 0x2d4   : > { %v665_v42 = vpop.permute.xlu1 %664 }
 0x2d5   : > { %668 = vst.msk [vmem:[#allocation3] sm:$0x3] %vm667_vm2, %v665_v42  ;;  %3564 = vmatmul.mubr.msk.f32.vlgmr.msra.gmra.mxu0 %vm513_vm1, %v665_v42 }
 0x2d6   : > { %3578 = vmatpush3.msra.mxu0 %v4095_v4  ;;  %3585 = vmatprep.mubr.msk.f32.mxu0 %vm3988_vm0, %v3987_v2 }
 0x2d7   : > { %3579 = vmatprep.subr.mxu0 %v3987_v2 }
 0x2d8   : > { %3580 = vmatpush3.msra.mxu0 %v4100_v5 }
 0x2d9   : > { %3581 = vmatprep.subr.mxu0 %v3987_v2 }
 0x2da   : > { %3582 = vmatpush3.msra.mxu0 %v4110_v6 }
 0x2db   : > { %3583 = vmatprep.subr.mxu0 %v3987_v2 }
 0x2dc   : > { %3584 = vmatpush3.msra.mxu0 %v4122_v7 }
 0x2dd   : > { %3599 = vmatprep.subr.mxu0 %v3987_v2 }
 0x395   : > { %v739_v44 = vpop.f32.mrf.mxu0 }
 0x396   : > { %v743_v45 = vadd.f32 %v739_v44, %v670_v43 }
 0x397   : > { %v3565_v46 = vpop.f32.mrf.mxu0 }
 0x398   : > { %3795 = vtanh.f32 %v743_v45  ;;  %v3377_v48 = vmul.f32 -1.442695, %v743_v45 }
 0x39a   : > { %3797 = vpow2.f32 %v3377_v48 }
 0x3a5   : > { %v3796_v47 = vpop.eup %3795 }
 0x3a6   : > { %753 = vrot.lane.b32.xlu0 %v3796_v47, %s3989_s23 }
 0x3a7   : > { %v3798_v49 = vpop.eup %3797 }
 0x3a8   : > { %v747_v50 = vadd.f32 1.0, %v3798_v49 }
 0x3aa   : > { %3799 = vrcp.f32 %v747_v50 }
 0x3b7   : > { %v3800_v51 = vpop.eup %3799 }
 0x3b8   : > { %v751_v54 = vmul.f32 %v3800_v51, %v656_v38  ;;  %v985_v38 = vld [vmem:[#allocation2 + $0x8] sm:$0x3] }
 0x418   : > { %v754_v52 = vpop.permute.xlu0 %753 }
 0x419   : > { %v756_v53 = vmul.f32 %v3800_v51, %v754_v52 }
 0x41b   : > { %758 = vrot.lane.b32.xlu1 %v756_v53, %s3990_s24 }
 0x48d   : > { %v759_v55 = vpop.permute.xlu1 %758 }
 0x48e   : > { %v761_v56 = vadd.f32 %v759_v55, %v751_v54 }
 0x490   : > { %3801 = vtanh.f32 %v761_v56 }
 0x49d   : > { %v3802_v57 = vpop.eup %3801 }
 0x49e   : > { %764 = vrot.lane.b32.xlu0 %v3802_v57, %s3989_s23 }
 0x510   : > { %v765_v58 = vpop.permute.xlu0 %764 }
 0x511   : > { %v767_v59 = vmul.f32 %v3800_v51, %v765_v58 }
 0x513   : > { %769 = vrot.lane.b32.xlu1 %v767_v59, %s3990_s24 }
 0x585   : > { %v770_v60 = vpop.permute.xlu1 %769 }
 0x586   : > { %773 = vst.msk [vmem:[#allocation3 + $0x2] sm:$0x3] %vm667_vm2, %v770_v60  ;;  %3575 = vmatmul.mubr.msk.f32.vlgmr.msra.gmra.mxu1 %vm513_vm1, %v770_v60 }
 0x587   : > { %3589 = vmatpush3.msra.mxu1 %v4095_v4  ;;  %3596 = vmatprep.mubr.msk.f32.mxu1 %vm3988_vm0, %v3987_v2 }
 0x588   : > { %3590 = vmatprep.subr.mxu1 %v3987_v2 }
 0x589   : > { %3591 = vmatpush3.msra.mxu1 %v4100_v5 }
 0x58a   : > { %3592 = vmatprep.subr.mxu1 %v3987_v2 }
 0x58b   : > { %3593 = vmatpush3.msra.mxu1 %v4110_v6 }
 0x58c   : > { %3594 = vmatprep.subr.mxu1 %v3987_v2 }
 0x58d   : > { %3595 = vmatpush3.msra.mxu1 %v4122_v7 }
 0x58e   : > { %3610 = vmatprep.subr.mxu1 %v3987_v2 }
 0x646   : > { %v844_v62 = vpop.f32.mrf.mxu1 }
 0x647   : > { %v848_v63 = vadd.f32 %v844_v62, %v775_v61 }
 0x648   : > { %v3576_v0 = vpop.f32.mrf.mxu1 }
 0x649   : > { %3803 = vtanh.f32 %v848_v63  ;;  %v3379_v3 = vmul.f32 -1.442695, %v848_v63 }
 0x64b   : > { %3805 = vpow2.f32 %v3379_v3 }
 0x656   : > { %v3804_v1 = vpop.eup %3803 }
 0x657   : > { %858 = vrot.lane.b32.xlu0 %v3804_v1, %s3989_s23 }
 0x658   : > { %v3806_v8 = vpop.eup %3805 }
 0x659   : > { %v852_v9 = vadd.f32 1.0, %v3806_v8 }
 0x65b   : > { %3807 = vrcp.f32 %v852_v9 }
 0x668   : > { %v3808_v10 = vpop.eup %3807 }
 0x669   : > { %v856_v13 = vmul.f32 %v3808_v10, %v761_v56  ;;  %v1090_v56 = vld [vmem:[#allocation2 + $0xa] sm:$0x3] }
 0x6c9   : > { %v859_v11 = vpop.permute.xlu0 %858 }
 0x6ca   : > { %v861_v12 = vmul.f32 %v3808_v10, %v859_v11  ;;  %v1195_v11 = vld [vmem:[#allocation2 + $0xc] sm:$0x3] }
 0x6cc   : > { %863 = vrot.lane.b32.xlu1 %v861_v12, %s3990_s24 }
 0x73e   : > { %v864_v14 = vpop.permute.xlu1 %863 }
 0x73f   : > { %v866_v15 = vadd.f32 %v864_v14, %v856_v13 }
 0x741   : > { %3809 = vtanh.f32 %v866_v15 }
 0x74e   : > { %v3810_v16 = vpop.eup %3809 }
 0x74f   : > { %869 = vrot.lane.b32.xlu0 %v3810_v16, %s3989_s23 }
 0x7c1   : > { %v870_v17 = vpop.permute.xlu0 %869 }
 0x7c2   : > { %v872_v18 = vmul.f32 %v3808_v10, %v870_v17 }
 0x7c4   : > { %874 = vrot.lane.b32.xlu1 %v872_v18, %s3990_s24 }
 0x836   : > { %v875_v19 = vpop.permute.xlu1 %874 }
 0x837   : > { %878 = vst.msk [vmem:[#allocation3 + $0x4] sm:$0x3] %vm667_vm2, %v875_v19  ;;  %3586 = vmatmul.mubr.msk.f32.vlgmr.msra.gmra.mxu0 %vm513_vm1, %v875_v19 }
 0x838   : > { %3600 = vmatpush3.msra.mxu0 %v4095_v4  ;;  %3607 = vmatprep.mubr.msk.f32.mxu0 %vm3988_vm0, %v3987_v2 }
 0x839   : > { %3601 = vmatprep.subr.mxu0 %v3987_v2 }
 0x83a   : > { %3602 = vmatpush3.msra.mxu0 %v4100_v5 }
 0x83b   : > { %3603 = vmatprep.subr.mxu0 %v3987_v2 }
 0x83c   : > { %3604 = vmatpush3.msra.mxu0 %v4110_v6 }
 0x83d   : > { %3605 = vmatprep.subr.mxu0 %v3987_v2 }
 0x83e   : > { %3606 = vmatpush3.msra.mxu0 %v4122_v7 }
 0x83f   : > { %3621 = vmatprep.subr.mxu0 %v3987_v2 }
 0x8f7   : > { %v949_v21 = vpop.f32.mrf.mxu0 }
 0x8f8   : > { %v953_v22 = vadd.f32 %v949_v21, %v880_v20 }
 0x8f9   : > { %v3587_v23 = vpop.f32.mrf.mxu0 }
 0x8fa   : > { %3811 = vtanh.f32 %v953_v22  ;;  %v3381_v25 = vmul.f32 -1.442695, %v953_v22 }
 0x8fc   : > { %3813 = vpow2.f32 %v3381_v25 }
 0x907   : > { %v3812_v24 = vpop.eup %3811 }
 0x908   : > { %963 = vrot.lane.b32.xlu0 %v3812_v24, %s3989_s23 }
 0x909   : > { %v3814_v26 = vpop.eup %3813 }
 0x90a   : > { %v957_v27 = vadd.f32 1.0, %v3814_v26 }
 0x90c   : > { %3815 = vrcp.f32 %v957_v27 }
 0x919   : > { %v3816_v28 = vpop.eup %3815 }
 0x91a   : > { %v961_v31 = vmul.f32 %v3816_v28, %v866_v15 }
 0x97a   : > { %v964_v29 = vpop.permute.xlu0 %963 }
 0x97b   : > { %v966_v30 = vmul.f32 %v3816_v28, %v964_v29  ;;  %v1300_v29 = vld [vmem:[#allocation2 + $0xe] sm:$0x3] }
 0x97d   : > { %968 = vrot.lane.b32.xlu1 %v966_v30, %s3990_s24 }
 0x9ef   : > { %v969_v32 = vpop.permute.xlu1 %968 }
 0x9f0   : > { %v971_v33 = vadd.f32 %v969_v32, %v961_v31 }
 0x9f2   : > { %3817 = vtanh.f32 %v971_v33 }
 0x9ff   : > { %v3818_v34 = vpop.eup %3817 }
 0xa00   : > { %974 = vrot.lane.b32.xlu0 %v3818_v34, %s3989_s23 }
 0xa72   : > { %v975_v35 = vpop.permute.xlu0 %974 }
 0xa73   : > { %v977_v36 = vmul.f32 %v3816_v28, %v975_v35 }
 0xa75   : > { %979 = vrot.lane.b32.xlu1 %v977_v36, %s3990_s24 }
 0xae7   : > { %v980_v37 = vpop.permute.xlu1 %979 }
 0xae8   : > { %983 = vst.msk [vmem:[#allocation3 + $0x6] sm:$0x3] %vm667_vm2, %v980_v37  ;;  %3597 = vmatmul.mubr.msk.f32.vlgmr.msra.gmra.mxu1 %vm513_vm1, %v980_v37 }
 0xae9   : > { %3611 = vmatpush3.msra.mxu1 %v4095_v4  ;;  %3618 = vmatprep.mubr.msk.f32.mxu1 %vm3988_vm0, %v3987_v2 }
 0xaea   : > { %3612 = vmatprep.subr.mxu1 %v3987_v2 }
 0xaeb   : > { %3613 = vmatpush3.msra.mxu1 %v4100_v5 }
 0xaec   : > { %3614 = vmatprep.subr.mxu1 %v3987_v2 }
 0xaed   : > { %3615 = vmatpush3.msra.mxu1 %v4110_v6 }
 0xaee   : > { %3616 = vmatprep.subr.mxu1 %v3987_v2 }
 0xaef   : > { %3617 = vmatpush3.msra.mxu1 %v4122_v7 }
 0xaf0   : > { %3632 = vmatprep.subr.bf16.mxu1 %v3987_v2 }
 0xba8   : > { %v1054_v39 = vpop.f32.mrf.mxu1 }
 0xba9   : > { %v1058_v40 = vadd.f32 %v1054_v39, %v985_v38 }
 0xbaa   : > { %v3598_v41 = vpop.f32.mrf.mxu1 }
 0xbab   : > { %3819 = vtanh.f32 %v1058_v40  ;;  %v3383_v43 = vmul.f32 -1.442695, %v1058_v40 }
 0xbad   : > { %3821 = vpow2.f32 %v3383_v43 }
 0xbb8   : > { %v3820_v42 = vpop.eup %3819 }
 0xbb9   : > { %1068 = vrot.lane.b32.xlu0 %v3820_v42, %s3989_s23 }
 0xbba   : > { %v3822_v44 = vpop.eup %3821 }
 0xbbb   : > { %v1062_v45 = vadd.f32 1.0, %v3822_v44  ;;  %v3784_v44 = vld [vmem:[%s4518_s6 + $0x8] sm:$0xff]  }
 0xbbd   : > { %3823 = vrcp.f32 %v1062_v45  ;;  %v3785_v45 = vld [vmem:[%s4518_s6] sm:$0xff]  }
 0xbca   : > { %v3824_v46 = vpop.eup %3823 }
 0xbcb   : > { %v1066_v49 = vmul.f32 %v3824_v46, %v971_v33 }
 0xc2b   : > { %v1069_v47 = vpop.permute.xlu0 %1068 }
 0xc2c   : > { %v1071_v48 = vmul.f32 %v3824_v46, %v1069_v47  ;;  %v4270_v47 = vld [vmem:[%s4519_s7 + $0x8] sm:$0xff] }
 0xc2e   : > { %1073 = vrot.lane.b32.xlu1 %v1071_v48, %s3990_s24  ;;  %v4275_v48 = vld [vmem:[%s4519_s7] sm:$0xff] }
 0xca0   : > { %v1074_v50 = vpop.permute.xlu1 %1073 }
 0xca1   : > { %v1076_v51 = vadd.f32 %v1074_v50, %v1066_v49 }
 0xca3   : > { %3825 = vtanh.f32 %v1076_v51 }
 0xcb0   : > { %v3826_v52 = vpop.eup %3825 }
 0xcb1   : > { %1079 = vrot.lane.b32.xlu0 %v3826_v52, %s3989_s23 }
 0xd23   : > { %v1080_v53 = vpop.permute.xlu0 %1079 }
 0xd24   : > { %v1082_v54 = vmul.f32 %v3824_v46, %v1080_v53 }
 0xd26   : > { %1084 = vrot.lane.b32.xlu1 %v1082_v54, %s3990_s24 }
 0xd98   : > { %v1085_v55 = vpop.permute.xlu1 %1084 }
 0xd99   : > { %1088 = vst.msk [vmem:[#allocation3 + $0x8] sm:$0x3] %vm667_vm2, %v1085_v55  ;;  %3608 = vmatmul.mubr.msk.f32.vlgmr.msra.gmra.mxu0 %vm513_vm1, %v1085_v55 }
 0xd9a   : > { %3622 = vmatpush3.msra.mxu0 %v4095_v4  ;;  %3629 = vmatprep.mubr.msk.f32.mxu0 %vm3988_vm0, %v3987_v2 }
 0xd9b   : > { %3623 = vmatprep.subr.mxu0 %v3987_v2 }
 0xd9c   : > { %3624 = vmatpush3.msra.mxu0 %v4100_v5 }
 0xd9d   : > { %3625 = vmatprep.subr.mxu0 %v3987_v2 }
 0xd9e   : > { %3626 = vmatpush3.msra.mxu0 %v4110_v6 }
 0xd9f   : > { %3627 = vmatprep.subr.mxu0 %v3987_v2 }
 0xda0   : > { %3628 = vmatpush3.msra.mxu0 %v4122_v7 }
 0xda1   : > { %3640 = vmatprep.subr.mxu0 %v3987_v2 }
 0xe59   : > { %v1159_v57 = vpop.f32.mrf.mxu0 }
 0xe5a   : > { %v1163_v4 = vadd.f32 %v1159_v57, %v1090_v56  ;;  %v3390_v56 = vld [vmem:[%s4520_s8] ss:$0 sm:$0xff] }
 0xe5b   : > { %v3609_v58 = vpop.f32.mrf.mxu0 }
 0xe5c   : > { %3827 = vtanh.f32 %v1163_v4  ;;  %v3385_v60 = vmul.f32 -1.442695, %v1163_v4 }
 0xe5e   : > { %3829 = vpow2.f32 %v3385_v60 }
 0xe69   : > { %v3828_v59 = vpop.eup %3827 }
 0xe6a   : > { %1173 = vrot.lane.b32.xlu0 %v3828_v59, %s3989_s23 }
 0xe6b   : > { %v3830_v5 = vpop.eup %3829 }
 0xe6c   : > { %v1167_v61 = vadd.f32 1.0, %v3830_v5 }
 0xe6e   : > { %3831 = vrcp.f32 %v1167_v61 }
 0xe7b   : > { %v3832_v6 = vpop.eup %3831 }
 0xe7c   : > { %v1171_v7 = vmul.f32 %v3832_v6, %v1076_v51  ;;  %v1404_v51 = vld [vmem:[#allocation3] sm:$0xff] }
 0xedc   : > { %v1174_v62 = vpop.permute.xlu0 %1173 }
 0xedd   : > { %v1176_v63 = vmul.f32 %v3832_v6, %v1174_v62 }
 0xedf   : > { %1178 = vrot.lane.b32.xlu1 %v1176_v63, %s3990_s24 }
 0xf51   : > { %v1179_v0 = vpop.permute.xlu1 %1178 }
 0xf52   : > { %v1181_v1 = vadd.f32 %v1179_v0, %v1171_v7 }
 0xf54   : > { %3833 = vtanh.f32 %v1181_v1 }
 0xf61   : > { %v3834_v3 = vpop.eup %3833 }
 0xf62   : > { %1184 = vrot.lane.b32.xlu0 %v3834_v3, %s3989_s23 }
 0xfd4   : > { %v1185_v8 = vpop.permute.xlu0 %1184 }
 0xfd5   : > { %v1187_v9 = vmul.f32 %v3832_v6, %v1185_v8 }
 0xfd7   : > { %1189 = vrot.lane.b32.xlu1 %v1187_v9, %s3990_s24 }
0x1049   : > { %v1190_v10 = vpop.permute.xlu1 %1189 }
0x104a   : > { %1193 = vst.msk [vmem:[#allocation3 + $0xa] sm:$0x3] %vm667_vm2, %v1190_v10  ;;  %3619 = vmatmul.mubr.msk.f32.vlgmr.msra.gmra.mxu1 %vm513_vm1, %v1190_v10 }
0x104b   : > { %3636 = vmatprep.mubr.msk.bf16.mxu1 %vm3988_vm0, %v3987_v2  ;;  %3633 = vmatpush3.bf16.msra.mxu1 %v3784_v44 }
0x104c   : > { %3634 = vmatprep.subr.bf16.mxu1 %v3987_v2 }
0x104f   : > { %3635 = vmatpush3.bf16.msra.mxu1 %v3785_v45 }
0x1050   : > { %3654 = vmatprep.subr.mxu1 %v3987_v2 }
0x110a   : > { %v1264_v12 = vpop.f32.mrf.mxu1 }
0x110b   : > { %v1268_v13 = vadd.f32 %v1264_v12, %v1195_v11 }
0x110c   : > { %v3620_v14 = vpop.f32.mrf.mxu1 }
0x110d   : > { %3835 = vtanh.f32 %v1268_v13  ;;  %v3387_v16 = vmul.f32 -1.442695, %v1268_v13 }
0x110f   : > { %3837 = vpow2.f32 %v3387_v16 }
0x111a   : > { %v3836_v15 = vpop.eup %3835 }
0x111b   : > { %1278 = vrot.lane.b32.xlu0 %v3836_v15, %s3989_s23 }
0x111c   : > { %v3838_v17 = vpop.eup %3837 }
0x111d   : > { %v1272_v18 = vadd.f32 1.0, %v3838_v17 }
0x111f   : > { %3839 = vrcp.f32 %v1272_v18 }
0x112c   : > { %v3840_v19 = vpop.eup %3839 }
0x112d   : > { %v1276_v22 = vmul.f32 %v3840_v19, %v1181_v1 }
0x118d   : > { %v1279_v20 = vpop.permute.xlu0 %1278 }
0x118e   : > { %v1281_v21 = vmul.f32 %v3840_v19, %v1279_v20 }
0x1190   : > { %1283 = vrot.lane.b32.xlu1 %v1281_v21, %s3990_s24 }
0x1202   : > { %v1284_v23 = vpop.permute.xlu1 %1283 }
0x1203   : > { %v1286_v24 = vadd.f32 %v1284_v23, %v1276_v22 }
0x1205   : > { %3841 = vtanh.f32 %v1286_v24 }
0x1212   : > { %v3842_v25 = vpop.eup %3841 }
0x1213   : > { %1289 = vrot.lane.b32.xlu0 %v3842_v25, %s3989_s23 }
0x1285   : > { %v1290_v26 = vpop.permute.xlu0 %1289 }
0x1286   : > { %v1292_v27 = vmul.f32 %v3840_v19, %v1290_v26 }
0x1288   : > { %1294 = vrot.lane.b32.xlu1 %v1292_v27, %s3990_s24 }
0x12fa   : > { %v1295_v28 = vpop.permute.xlu1 %1294 }
0x12fb   : > { %1298 = vst.msk [vmem:[#allocation3 + $0xc] sm:$0x3] %vm667_vm2, %v1295_v28  ;;  %3630 = vmatmul.mubr.msk.f32.vlgmr.msra.gmra.mxu0 %vm513_vm1, %v1295_v28 }
0x12fc   : > { %3644 = vmatprep.mubr.msk.f32.mxu0 %vm3988_vm0, %v3987_v2  ;;  %3641 = vmatpush3.msra.mxu0 %v4270_v47 }
0x12fd   : > { %3642 = vmatprep.subr.mxu0 %v3987_v2 }
0x12fe   : > { %3643 = vmatpush3.msra.mxu0 %v4275_v48 }
0x12ff   : > { %3645 = vmatmul.mubr.f32.vlgmr.msra.gmra.mxu0 %v3987_v2  ;;  %3647 = vmatprep.subr.mxu0 %v3987_v2 }
0x1300   : > { %3648 = vmatpush3.msra.mxu0 %v4270_v47  ;;  %3651 = vmatprep.mubr.msk.f32.mxu0 %vm3988_vm0, %v3987_v2 }
0x1301   : > { %3649 = vmatprep.subr.mxu0 %v3987_v2 }
0x1302   : > { %3650 = vmatpush3.msra.mxu0 %v4275_v48 }
0x1303   : > { %3661 = vmatprep.subr.mxu0 %v3987_v2 }
0x13bb   : > { %v1369_v30 = vpop.f32.mrf.mxu0 }
0x13bc   : > { %v1373_v31 = vadd.f32 %v1369_v30, %v1300_v29 }
0x13bd   : > { %v3631_v32 = vpop.f32.mrf.mxu0 }
0x13be   : > { %3843 = vtanh.f32 %v1373_v31  ;;  %v3389_v34 = vmul.f32 -1.442695, %v1373_v31 }
0x13bf   : > { %v1549_v54 = vpop.f32.mrf.mxu0 }
0x13c0   : > { %3845 = vpow2.f32 %v3389_v34 }
0x13c1   : > { %v3646_v55 = vpop.f32.mrf.mxu0 }
0x13cb   : > { %v3844_v33 = vpop.eup %3843 }
0x13cc   : > { %1383 = vrot.lane.b32.xlu0 %v3844_v33, %s3989_s23 }
0x13cd   : > { %v3846_v35 = vpop.eup %3845 }
0x13ce   : > { %v1377_v36 = vadd.f32 1.0, %v3846_v35 }
0x13d0   : > { %3847 = vrcp.f32 %v1377_v36 }
0x13dd   : > { %v3848_v37 = vpop.eup %3847 }
0x13de   : > { %v1381_v40 = vmul.f32 %v3848_v37, %v1286_v24 }
0x143e   : > { %v1384_v38 = vpop.permute.xlu0 %1383 }
0x143f   : > { %v1386_v39 = vmul.f32 %v3848_v37, %v1384_v38 }
0x1441   : > { %1388 = vrot.lane.b32.xlu1 %v1386_v39, %s3990_s24 }
0x14b3   : > { %v1389_v41 = vpop.permute.xlu1 %1388 }
0x14b4   : > { %v1391_v42 = vadd.f32 %v1389_v41, %v1381_v40 }
0x14b6   : > { %3849 = vtanh.f32 %v1391_v42 }
0x14c3   : > { %v3850_v43 = vpop.eup %3849 }
0x14c4   : > { %1394 = vrot.lane.b32.xlu0 %v3850_v43, %s3989_s23 }
0x1536   : > { %v1395_v46 = vpop.permute.xlu0 %1394 }
0x1537   : > { %v1397_v49 = vmul.f32 %v3848_v37, %v1395_v46 }
0x1539   : > { %1399 = vrot.lane.b32.xlu1 %v1397_v49, %s3990_s24 }
0x15ab   : > { %v1400_v50 = vpop.permute.xlu1 %1399 }
0x15ac   : > { %1403 = vst.msk [vmem:[#allocation3 + $0xe] sm:$0x3] %vm667_vm2, %v1400_v50 }
0x15b3   : > { %v1405_v52 = vld [vmem:[#allocation3 + $0x8] sm:$0xff] }
0x15b4   : > { %v1406_v53 = vpack.c.bf16 %v1405_v52, %v1404_v51 }
0x15b6   : > { %3637 = vmatmul.mubr.msk.bf16.vlgmr.msra.gmra.mxu1 %vm513_vm1, %v1406_v53 }
0x15b7   : > { %3655 = vmatpush3.msra.mxu1 %v4270_v47  ;;  %3658 = vmatprep.mubr.msk.f32.mxu1 %vm3988_vm0, %v3987_v2 }
0x15b8   : > { %3656 = vmatprep.subr.mxu1 %v3987_v2 }
0x15b9   : > { %3657 = vmatpush3.msra.mxu1 %v4275_v48 }
0x15ba   : > { %3668 = vmatprep.subr.mxu1 %v3987_v2 }
0x1676   : > { %v1467_v57 = vpop.f32.mrf.mxu1 }
0x1677   : > { %v1468_v4 = vadd.f32 %v3390_v56, %v1467_v57 }
0x1678   : > { %v3638_v58 = vpop.f32.mrf.mxu1 }
0x1679   : > { %1475 = vst.msk [vmem:[#allocation4] sm:$0xff] %vm1474_vm3, %v1468_v4 }
0x167a   : > { %v1470_v59 = vpop.f32.mrf.mxu1 }
0x167b   : > { %v1471_v60 = vadd.f32 %v3390_v56, %v1470_v59 }
0x167c   : > { %v3639_v5 = vpop.f32.mrf.mxu1 }
0x167d   : > { %1476 = vst.msk [vmem:[#allocation4 + $0x8] sm:$0xff] %vm1474_vm3, %v1471_v60 }
0x1680   : > { %v1479_v61 = vld [vmem:[#allocation4] sm:$0x3]  ;;  %v1585_v16 = vld [vmem:[#allocation4 + $0x2] sm:$0x3]  ;;  %v1690_v34 = vld [vmem:[#allocation4 + $0x4] sm:$0x3] }
0x1681   : > { %v1553_v6 = vadd.f32 %v1549_v54, %v1479_v61  ;;  %v1795_v54 = vld [vmem:[#allocation4 + $0x6] sm:$0x3] }
0x1683   : > { %3851 = vtanh.f32 %v1553_v6  ;;  %v3394_v63 = vmul.f32 -1.442695, %v1553_v6 }
0x1685   : > { %3853 = vpow2.f32 %v3394_v63 }
0x1690   : > { %v3852_v62 = vpop.eup %3851 }
0x1691   : > { %1563 = vrot.lane.b32.xlu0 %v3852_v62, %s3991_s20 }
0x1692   : > { %v3854_v7 = vpop.eup %3853 }
0x1693   : > { %v1557_v0 = vadd.f32 1.0, %v3854_v7 }
0x1695   : > { %3855 = vrcp.f32 %v1557_v0 }
0x16a2   : > { %v3856_v1 = vpop.eup %3855 }
0x16a3   : > { %v1561_v9 = vmul.f32 0.0, %v3856_v1 }
0x1703   : > { %v1564_v3 = vpop.permute.xlu0 %1563 }
0x1704   : > { %v1566_v8 = vmul.f32 %v3856_v1, %v1564_v3 }
0x1706   : > { %1568 = vrot.lane.b32.xlu1 %v1566_v8, %s3992_s21 }
0x1778   : > { %v1569_v10 = vpop.permute.xlu1 %1568 }
0x1779   : > { %v1571_v11 = vadd.f32 %v1569_v10, %v1561_v9  ;;  %v1900_v9 = vld [vmem:[#allocation4 + $0x8] sm:$0x3] }
0x177b   : > { %3857 = vtanh.f32 %v1571_v11 }
0x1788   : > { %v3858_v12 = vpop.eup %3857 }
0x1789   : > { %1574 = vrot.lane.b32.xlu0 %v3858_v12, %s3990_s24 }
0x17fb   : > { %v1575_v13 = vpop.permute.xlu0 %1574 }
0x17fc   : > { %v1577_v14 = vmul.f32 %v3856_v1, %v1575_v13 }
0x17fe   : > { %1579 = vrot.lane.b32.xlu1 %v1577_v14, %s3993_s22 }
0x1870   : > { %v1580_v15 = vpop.permute.xlu1 %1579 }
0x1871   : > { %1583 = vst.msk [vmem:[#allocation5] sm:$0x3] %vm1582_vm4, %v1580_v15  ;;  %3652 = vmatmul.mubr.msk.f32.vlgmr.msra.gmra.mxu0 %vm1480_vm5, %v1580_v15 }
0x1872   : > { %3662 = vmatpush3.msra.mxu0 %v4270_v47  ;;  %3665 = vmatprep.mubr.msk.f32.mxu0 %vm3988_vm0, %v3987_v2 }
0x1873   : > { %3663 = vmatprep.subr.mxu0 %v3987_v2 }
0x1874   : > { %3664 = vmatpush3.msra.mxu0 %v4275_v48 }
0x1875   : > { %3675 = vmatprep.subr.mxu0 %v3987_v2 }
0x1931   : > { %v1654_v17 = vpop.f32.mrf.mxu0 }
0x1932   : > { %v1658_v18 = vadd.f32 %v1654_v17, %v1585_v16 }
0x1933   : > { %v3653_v19 = vpop.f32.mrf.mxu0 }
0x1934   : > { %3859 = vtanh.f32 %v1658_v18  ;;  %v3396_v21 = vmul.f32 -1.442695, %v1658_v18 }
0x1936   : > { %3861 = vpow2.f32 %v3396_v21 }
0x1941   : > { %v3860_v20 = vpop.eup %3859 }
0x1942   : > { %1668 = vrot.lane.b32.xlu0 %v3860_v20, %s3991_s20 }
0x1943   : > { %v3862_v22 = vpop.eup %3861 }
0x1944   : > { %v1662_v23 = vadd.f32 1.0, %v3862_v22 }
0x1946   : > { %3863 = vrcp.f32 %v1662_v23 }
0x1953   : > { %v3864_v24 = vpop.eup %3863 }
0x1954   : > { %v1666_v27 = vmul.f32 %v3864_v24, %v1571_v11 }
0x19b4   : > { %v1669_v25 = vpop.permute.xlu0 %1668 }
0x19b5   : > { %v1671_v26 = vmul.f32 %v3864_v24, %v1669_v25 }
0x19b7   : > { %1673 = vrot.lane.b32.xlu1 %v1671_v26, %s3992_s21 }
0x1a29   : > { %v1674_v28 = vpop.permute.xlu1 %1673 }
0x1a2a   : > { %v1676_v29 = vadd.f32 %v1674_v28, %v1666_v27  ;;  %v2005_v27 = vld [vmem:[#allocation4 + $0xa] sm:$0x3] }
0x1a2c   : > { %3865 = vtanh.f32 %v1676_v29 }
0x1a39   : > { %v3866_v30 = vpop.eup %3865 }
0x1a3a   : > { %1679 = vrot.lane.b32.xlu0 %v3866_v30, %s3990_s24 }
0x1aac   : > { %v1680_v31 = vpop.permute.xlu0 %1679 }
0x1aad   : > { %v1682_v32 = vmul.f32 %v3864_v24, %v1680_v31 }
0x1aaf   : > { %1684 = vrot.lane.b32.xlu1 %v1682_v32, %s3993_s22 }
0x1b21   : > { %v1685_v33 = vpop.permute.xlu1 %1684 }
0x1b22   : > { %1688 = vst.msk [vmem:[#allocation5 + $0x2] sm:$0x3] %vm1582_vm4, %v1685_v33  ;;  %3659 = vmatmul.mubr.msk.f32.vlgmr.msra.gmra.mxu1 %vm1480_vm5, %v1685_v33 }
0x1b23   : > { %3669 = vmatpush3.msra.mxu1 %v4270_v47  ;;  %3672 = vmatprep.mubr.msk.f32.mxu1 %vm3988_vm0, %v3987_v2 }
0x1b24   : > { %3670 = vmatprep.subr.mxu1 %v3987_v2 }
0x1b25   : > { %3671 = vmatpush3.msra.mxu1 %v4275_v48 }
0x1b26   : > { %3682 = vmatprep.subr.mxu1 %v3987_v2 }
0x1be2   : > { %v1759_v35 = vpop.f32.mrf.mxu1 }
0x1be3   : > { %v1763_v36 = vadd.f32 %v1759_v35, %v1690_v34 }
0x1be4   : > { %v3660_v37 = vpop.f32.mrf.mxu1 }
0x1be5   : > { %3867 = vtanh.f32 %v1763_v36  ;;  %v3398_v39 = vmul.f32 -1.442695, %v1763_v36 }
0x1be7   : > { %3869 = vpow2.f32 %v3398_v39 }
0x1bf2   : > { %v3868_v38 = vpop.eup %3867 }
0x1bf3   : > { %1773 = vrot.lane.b32.xlu0 %v3868_v38, %s3991_s20 }
0x1bf4   : > { %v3870_v40 = vpop.eup %3869 }
0x1bf5   : > { %v1767_v41 = vadd.f32 1.0, %v3870_v40 }
0x1bf7   : > { %3871 = vrcp.f32 %v1767_v41 }
0x1c04   : > { %v3872_v42 = vpop.eup %3871 }
0x1c05   : > { %v1771_v45 = vmul.f32 %v3872_v42, %v1676_v29 }
0x1c65   : > { %v1774_v43 = vpop.permute.xlu0 %1773 }
0x1c66   : > { %v1776_v44 = vmul.f32 %v3872_v42, %v1774_v43  ;;  %v2110_v43 = vld [vmem:[#allocation4 + $0xc] sm:$0x3] }
0x1c68   : > { %1778 = vrot.lane.b32.xlu1 %v1776_v44, %s3992_s21 }
0x1cda   : > { %v1779_v46 = vpop.permute.xlu1 %1778 }
0x1cdb   : > { %v1781_v49 = vadd.f32 %v1779_v46, %v1771_v45 }
0x1cdd   : > { %3873 = vtanh.f32 %v1781_v49 }
0x1cea   : > { %v3874_v50 = vpop.eup %3873 }
0x1ceb   : > { %1784 = vrot.lane.b32.xlu0 %v3874_v50, %s3990_s24 }
0x1d5d   : > { %v1785_v51 = vpop.permute.xlu0 %1784 }
0x1d5e   : > { %v1787_v52 = vmul.f32 %v3872_v42, %v1785_v51 }
0x1d60   : > { %1789 = vrot.lane.b32.xlu1 %v1787_v52, %s3993_s22 }
0x1dd2   : > { %v1790_v53 = vpop.permute.xlu1 %1789 }
0x1dd3   : > { %1793 = vst.msk [vmem:[#allocation5 + $0x4] sm:$0x3] %vm1582_vm4, %v1790_v53  ;;  %3666 = vmatmul.mubr.msk.f32.vlgmr.msra.gmra.mxu0 %vm1480_vm5, %v1790_v53 }
0x1dd4   : > { %3676 = vmatpush3.msra.mxu0 %v4270_v47  ;;  %3679 = vmatprep.mubr.msk.f32.mxu0 %vm3988_vm0, %v3987_v2 }
0x1dd5   : > { %3677 = vmatprep.subr.mxu0 %v3987_v2 }
0x1dd6   : > { %3678 = vmatpush3.msra.mxu0 %v4275_v48 }
0x1dd7   : > { %3689 = vmatprep.subr.mxu0 %v3987_v2 }
0x1e93   : > { %v1864_v55 = vpop.f32.mrf.mxu0 }
0x1e94   : > { %v1868_v56 = vadd.f32 %v1864_v55, %v1795_v54 }
0x1e95   : > { %v3667_v57 = vpop.f32.mrf.mxu0 }
0x1e96   : > { %3875 = vtanh.f32 %v1868_v56  ;;  %v3400_v58 = vmul.f32 -1.442695, %v1868_v56 }
0x1e98   : > { %3877 = vpow2.f32 %v3400_v58 }
0x1ea3   : > { %v3876_v4 = vpop.eup %3875 }
0x1ea4   : > { %1878 = vrot.lane.b32.xlu0 %v3876_v4, %s3991_s20 }
0x1ea5   : > { %v3878_v59 = vpop.eup %3877 }
0x1ea6   : > { %v1872_v60 = vadd.f32 1.0, %v3878_v59 }
0x1ea8   : > { %3879 = vrcp.f32 %v1872_v60 }
0x1eb5   : > { %v3880_v5 = vpop.eup %3879 }
0x1eb6   : > { %v1876_v62 = vmul.f32 %v3880_v5, %v1781_v49 }
0x1f16   : > { %v1879_v61 = vpop.permute.xlu0 %1878 }
0x1f17   : > { %v1881_v6 = vmul.f32 %v3880_v5, %v1879_v61  ;;  %v2215_v61 = vld [vmem:[#allocation4 + $0xe] sm:$0x3] }
0x1f19   : > { %1883 = vrot.lane.b32.xlu1 %v1881_v6, %s3992_s21 }
0x1f8b   : > { %v1884_v63 = vpop.permute.xlu1 %1883 }
0x1f8c   : > { %v1886_v7 = vadd.f32 %v1884_v63, %v1876_v62 }
0x1f8e   : > { %3881 = vtanh.f32 %v1886_v7 }
0x1f9b   : > { %v3882_v0 = vpop.eup %3881 }
0x1f9c   : > { %1889 = vrot.lane.b32.xlu0 %v3882_v0, %s3990_s24 }
0x200e   : > { %v1890_v1 = vpop.permute.xlu0 %1889 }
0x200f   : > { %v1892_v3 = vmul.f32 %v3880_v5, %v1890_v1 }
0x2011   : > { %1894 = vrot.lane.b32.xlu1 %v1892_v3, %s3993_s22 }
0x2083   : > { %v1895_v8 = vpop.permute.xlu1 %1894 }
0x2084   : > { %1898 = vst.msk [vmem:[#allocation5 + $0x6] sm:$0x3] %vm1582_vm4, %v1895_v8  ;;  %3673 = vmatmul.mubr.msk.f32.vlgmr.msra.gmra.mxu1 %vm1480_vm5, %v1895_v8 }
0x2085   : > { %3683 = vmatpush3.msra.mxu1 %v4270_v47  ;;  %3686 = vmatprep.mubr.msk.f32.mxu1 %vm3988_vm0, %v3987_v2 }
0x2086   : > { %3684 = vmatprep.subr.mxu1 %v3987_v2 }
0x2087   : > { %3685 = vmatpush3.msra.mxu1 %v4275_v48 }
0x2088   : > { %3696 = vmatprep.subr.bf16.mxu1 %v3987_v2 }
0x2144   : > { %v1969_v10 = vpop.f32.mrf.mxu1 }
0x2145   : > { %v1973_v11 = vadd.f32 %v1969_v10, %v1900_v9 }
0x2146   : > { %v3674_v12 = vpop.f32.mrf.mxu1 }
0x2147   : > { %3883 = vtanh.f32 %v1973_v11  ;;  %v3402_v14 = vmul.f32 -1.442695, %v1973_v11 }
0x2149   : > { %3885 = vpow2.f32 %v3402_v14 }
0x2154   : > { %v3884_v13 = vpop.eup %3883 }
0x2155   : > { %1983 = vrot.lane.b32.xlu0 %v3884_v13, %s3991_s20 }
0x2156   : > { %v3886_v15 = vpop.eup %3885 }
0x2157   : > { %v1977_v16 = vadd.f32 1.0, %v3886_v15  ;;  %v3786_v15 = vld [vmem:[%s4521_s9] sm:$0xff]  }
0x2159   : > { %3887 = vrcp.f32 %v1977_v16 }
0x2166   : > { %v3888_v17 = vpop.eup %3887 }
0x2167   : > { %v1981_v20 = vmul.f32 %v3888_v17, %v1886_v7 }
0x21c7   : > { %v1984_v18 = vpop.permute.xlu0 %1983 }
0x21c8   : > { %v1986_v19 = vmul.f32 %v3888_v17, %v1984_v18  ;;  %v4393_v18 = vld [vmem:[%s4522_s10] sm:$0xff] }
0x21ca   : > { %1988 = vrot.lane.b32.xlu1 %v1986_v19, %s3992_s21 }
0x223c   : > { %v1989_v21 = vpop.permute.xlu1 %1988 }
0x223d   : > { %v1991_v22 = vadd.f32 %v1989_v21, %v1981_v20  ;;  %v2319_v21 = vld [vmem:[#allocation5] sm:$0xff] }
0x223f   : > { %3889 = vtanh.f32 %v1991_v22 }
0x224c   : > { %v3890_v23 = vpop.eup %3889 }
0x224d   : > { %1994 = vrot.lane.b32.xlu0 %v3890_v23, %s3990_s24 }
0x22bf   : > { %v1995_v24 = vpop.permute.xlu0 %1994 }
0x22c0   : > { %v1997_v25 = vmul.f32 %v3888_v17, %v1995_v24  ;;  %v4388_v17 = vld [vmem:[%s4522_s10 + $0x8] sm:$0xff] }
0x22c2   : > { %1999 = vrot.lane.b32.xlu1 %v1997_v25, %s3993_s22 }
0x2334   : > { %v2000_v26 = vpop.permute.xlu1 %1999 }
0x2335   : > { %2003 = vst.msk [vmem:[#allocation5 + $0x8] sm:$0x3] %vm1582_vm4, %v2000_v26  ;;  %3680 = vmatmul.mubr.msk.f32.vlgmr.msra.gmra.mxu0 %vm1480_vm5, %v2000_v26  ;;  %v3409_v26 = vld [vmem:[%s4523_s11] ss:$0 sm:$0xff] }
0x2336   : > { %3690 = vmatpush3.msra.mxu0 %v4270_v47  ;;  %3693 = vmatprep.mubr.msk.f32.mxu0 %vm3988_vm0, %v3987_v2 }
0x2337   : > { %3691 = vmatprep.subr.mxu0 %v3987_v2 }
0x2338   : > { %3692 = vmatpush3.msra.mxu0 %v4275_v48 }
0x2339   : > { %3702 = vmatprep.subr.mxu0 %v3987_v2 }
0x23f5   : > { %v2074_v28 = vpop.f32.mrf.mxu0 }
0x23f6   : > { %v2078_v29 = vadd.f32 %v2074_v28, %v2005_v27 }
0x23f7   : > { %v3681_v30 = vpop.f32.mrf.mxu0 }
0x23f8   : > { %3891 = vtanh.f32 %v2078_v29  ;;  %v3404_v32 = vmul.f32 -1.442695, %v2078_v29 }
0x23fa   : > { %3893 = vpow2.f32 %v3404_v32 }
0x2405   : > { %v3892_v31 = vpop.eup %3891 }
0x2406   : > { %2088 = vrot.lane.b32.xlu0 %v3892_v31, %s3991_s20 }
0x2407   : > { %v3894_v47 = vpop.eup %3893 }
0x2408   : > { %v2082_v33 = vadd.f32 1.0, %v3894_v47 }
0x240a   : > { %3895 = vrcp.f32 %v2082_v33 }
0x2417   : > { %v3896_v34 = vpop.eup %3895 }
0x2418   : > { %v2086_v48 = vmul.f32 %v3896_v34, %v1991_v22 }
0x2478   : > { %v2089_v35 = vpop.permute.xlu0 %2088 }
0x2479   : > { %v2091_v36 = vmul.f32 %v3896_v34, %v2089_v35 }
0x247b   : > { %2093 = vrot.lane.b32.xlu1 %v2091_v36, %s3992_s21 }
0x24ed   : > { %v2094_v37 = vpop.permute.xlu1 %2093 }
0x24ee   : > { %v2096_v38 = vadd.f32 %v2094_v37, %v2086_v48 }
0x24f0   : > { %3897 = vtanh.f32 %v2096_v38 }
0x24fd   : > { %v3898_v39 = vpop.eup %3897 }
0x24fe   : > { %2099 = vrot.lane.b32.xlu0 %v3898_v39, %s3990_s24 }
0x2570   : > { %v2100_v40 = vpop.permute.xlu0 %2099 }
0x2571   : > { %v2102_v41 = vmul.f32 %v3896_v34, %v2100_v40 }
0x2573   : > { %2104 = vrot.lane.b32.xlu1 %v2102_v41, %s3993_s22 }
0x25e5   : > { %v2105_v42 = vpop.permute.xlu1 %2104 }
0x25e6   : > { %2108 = vst.msk [vmem:[#allocation5 + $0xa] sm:$0x3] %vm1582_vm4, %v2105_v42  ;;  %3687 = vmatmul.mubr.msk.f32.vlgmr.msra.gmra.mxu1 %vm1480_vm5, %v2105_v42 }
0x25e7   : > { %3698 = vmatprep.mubr.msk.bf16.mxu1 %vm3988_vm0, %v3987_v2  ;;  %3697 = vmatpush3.bf16.msra.mxu1 %v3786_v15 }
0x25e8   : > { %3716 = vmatprep.subr.mxu1 %v3987_v2 }
0x26a6   : > { %v2179_v44 = vpop.f32.mrf.mxu1 }
0x26a7   : > { %v2183_v45 = vadd.f32 %v2179_v44, %v2110_v43 }
0x26a8   : > { %v3688_v46 = vpop.f32.mrf.mxu1 }
0x26a9   : > { %3899 = vtanh.f32 %v2183_v45  ;;  %v3406_v50 = vmul.f32 -1.442695, %v2183_v45 }
0x26ab   : > { %3901 = vpow2.f32 %v3406_v50 }
0x26b6   : > { %v3900_v49 = vpop.eup %3899 }
0x26b7   : > { %2193 = vrot.lane.b32.xlu0 %v3900_v49, %s3991_s20 }
0x26b8   : > { %v3902_v51 = vpop.eup %3901 }
0x26b9   : > { %v2187_v52 = vadd.f32 1.0, %v3902_v51 }
0x26bb   : > { %3903 = vrcp.f32 %v2187_v52 }
0x26c8   : > { %v3904_v53 = vpop.eup %3903 }
0x26c9   : > { %v2191_v56 = vmul.f32 %v3904_v53, %v2096_v38 }
0x2729   : > { %v2194_v54 = vpop.permute.xlu0 %2193 }
0x272a   : > { %v2196_v55 = vmul.f32 %v3904_v53, %v2194_v54 }
0x272c   : > { %2198 = vrot.lane.b32.xlu1 %v2196_v55, %s3992_s21 }
0x279e   : > { %v2199_v57 = vpop.permute.xlu1 %2198 }
0x279f   : > { %v2201_v4 = vadd.f32 %v2199_v57, %v2191_v56 }
0x27a1   : > { %3905 = vtanh.f32 %v2201_v4 }
0x27ae   : > { %v3906_v58 = vpop.eup %3905 }
0x27af   : > { %2204 = vrot.lane.b32.xlu0 %v3906_v58, %s3990_s24 }
0x2821   : > { %v2205_v59 = vpop.permute.xlu0 %2204 }
0x2822   : > { %v2207_v60 = vmul.f32 %v3904_v53, %v2205_v59 }
0x2824   : > { %2209 = vrot.lane.b32.xlu1 %v2207_v60, %s3993_s22 }
0x2896   : > { %v2210_v5 = vpop.permute.xlu1 %2209 }
0x2897   : > { %2213 = vst.msk [vmem:[#allocation5 + $0xc] sm:$0x3] %vm1582_vm4, %v2210_v5  ;;  %3694 = vmatmul.mubr.msk.f32.vlgmr.msra.gmra.mxu0 %vm1480_vm5, %v2210_v5 }
0x2898   : > { %3706 = vmatprep.mubr.msk.f32.mxu0 %vm3988_vm0, %v3987_v2  ;;  %3703 = vmatpush3.msra.mxu0 %v4388_v17 }
0x2899   : > { %3704 = vmatprep.subr.mxu0 %v3987_v2 }
0x289a   : > { %3705 = vmatpush3.msra.mxu0 %v4393_v18 }
0x289b   : > { %3707 = vmatmul.mubr.f32.vlgmr.msra.gmra.mxu0 %v3987_v2  ;;  %3709 = vmatprep.subr.mxu0 %v3987_v2 }
0x289c   : > { %3710 = vmatpush3.msra.mxu0 %v4388_v17  ;;  %3713 = vmatprep.mubr.msk.f32.mxu0 %vm3988_vm0, %v3987_v2 }
0x289d   : > { %3711 = vmatprep.subr.mxu0 %v3987_v2 }
0x289e   : > { %3712 = vmatpush3.msra.mxu0 %v4393_v18 }
0x289f   : > { %3723 = vmatprep.subr.mxu0 %v3987_v2 }
0x2957   : > { %v2284_v6 = vpop.f32.mrf.mxu0 }
0x2958   : > { %v2288_v62 = vadd.f32 %v2284_v6, %v2215_v61 }
0x2959   : > { %v3695_v63 = vpop.f32.mrf.mxu0 }
0x295a   : > { %3907 = vtanh.f32 %v2288_v62  ;;  %v3408_v0 = vmul.f32 -1.442695, %v2288_v62 }
0x295b   : > { %v2452_v24 = vpop.f32.mrf.mxu0 }
0x295c   : > { %3909 = vpow2.f32 %v3408_v0 }
0x295d   : > { %v3708_v25 = vpop.f32.mrf.mxu0 }
0x2967   : > { %v3908_v7 = vpop.eup %3907 }
0x2968   : > { %2298 = vrot.lane.b32.xlu0 %v3908_v7, %s3991_s20 }
0x2969   : > { %v3910_v1 = vpop.eup %3909 }
0x296a   : > { %v2292_v3 = vadd.f32 1.0, %v3910_v1 }
0x296c   : > { %3911 = vrcp.f32 %v2292_v3 }
0x2979   : > { %v3912_v8 = vpop.eup %3911 }
0x297a   : > { %v2296_v11 = vmul.f32 %v3912_v8, %v2201_v4 }
0x29da   : > { %v2299_v9 = vpop.permute.xlu0 %2298 }
0x29db   : > { %v2301_v10 = vmul.f32 %v3912_v8, %v2299_v9 }
0x29dd   : > { %2303 = vrot.lane.b32.xlu1 %v2301_v10, %s3992_s21 }
0x2a4f   : > { %v2304_v12 = vpop.permute.xlu1 %2303 }
0x2a50   : > { %v2306_v13 = vadd.f32 %v2304_v12, %v2296_v11 }
0x2a52   : > { %3913 = vtanh.f32 %v2306_v13 }
0x2a5f   : > { %v3914_v14 = vpop.eup %3913 }
0x2a60   : > { %2309 = vrot.lane.b32.xlu0 %v3914_v14, %s3990_s24 }
0x2ad2   : > { %v2310_v16 = vpop.permute.xlu0 %2309 }
0x2ad3   : > { %v2312_v19 = vmul.f32 %v3912_v8, %v2310_v16 }
0x2ad5   : > { %2314 = vrot.lane.b32.xlu1 %v2312_v19, %s3993_s22 }
0x2b47   : > { %v2315_v20 = vpop.permute.xlu1 %2314 }
0x2b48   : > { %2318 = vst.msk [vmem:[#allocation5 + $0xe] sm:$0x3] %vm1582_vm4, %v2315_v20 }
0x2b4f   : > { %v2320_v22 = vld [vmem:[#allocation5 + $0x8] sm:$0xff] }
0x2b50   : > { %v2321_v23 = vpack.c.bf16 %v2320_v22, %v2319_v21 }
0x2b52   : > { %3699 = vmatmul.mubr.msk.bf16.vlgmr.msra.gmra.mxu1 %vm1480_vm5, %v2321_v23 }
0x2b53   : > { %3717 = vmatpush3.msra.mxu1 %v4388_v17  ;;  %3720 = vmatprep.mubr.msk.f32.mxu1 %vm3988_vm0, %v3987_v2 }
0x2b54   : > { %3718 = vmatprep.subr.mxu1 %v3987_v2 }
0x2b55   : > { %3719 = vmatpush3.msra.mxu1 %v4393_v18 }
0x2b56   : > { %3730 = vmatprep.subr.mxu1 %v3987_v2 }
0x2c12   : > { %v2374_v27 = vpop.f32.mrf.mxu1 }
0x2c13   : > { %v2375_v28 = vadd.f32 %v3409_v26, %v2374_v27 }
0x2c14   : > { %v3700_v29 = vpop.f32.mrf.mxu1 }
0x2c15   : > { %2381 = vst.msk [vmem:[#allocation6] sm:$0xff] %vm1474_vm3, %v2375_v28 }
0x2c16   : > { %v2377_v30 = vpop.f32.mrf.mxu1 }
0x2c17   : > { %v2378_v31 = vadd.f32 %v3409_v26, %v2377_v30 }
0x2c18   : > { %v3701_v32 = vpop.f32.mrf.mxu1 }
0x2c19   : > { %2382 = vst.msk [vmem:[#allocation6 + $0x8] sm:$0xff] %vm1474_vm3, %v2378_v31 }
0x2c1c   : > { %v2385_v47 = vld [vmem:[#allocation6] sm:$0x3]  ;;  %v2487_v49 = vld [vmem:[#allocation6 + $0x2] sm:$0x3]  ;;  %v2592_v7 = vld [vmem:[#allocation6 + $0x4] sm:$0x3] }
0x2c1d   : > { %v2456_v33 = vadd.f32 %v2452_v24, %v2385_v47  ;;  %v2697_v24 = vld [vmem:[#allocation6 + $0x6] sm:$0x3] }
0x2c1f   : > { %3915 = vtanh.f32 %v2456_v33  ;;  %v3412_v35 = vmul.f32 -1.442695, %v2456_v33 }
0x2c21   : > { %3917 = vpow2.f32 %v3412_v35 }
0x2c2c   : > { %v3916_v34 = vpop.eup %3915 }
0x2c2d   : > { %2466 = vrot.lane.b32.xlu0 %v3916_v34, %s3991_s20 }
0x2c2e   : > { %v3918_v36 = vpop.eup %3917 }
0x2c2f   : > { %v2460_v48 = vadd.f32 1.0, %v3918_v36 }
0x2c31   : > { %3919 = vrcp.f32 %v2460_v48 }
0x2c3e   : > { %v3920_v37 = vpop.eup %3919 }
0x2c3f   : > { %v2464_v40 = vmul.f32 0.0, %v3920_v37 }
0x2c9f   : > { %v2467_v38 = vpop.permute.xlu0 %2466 }
0x2ca0   : > { %v2469_v39 = vmul.f32 %v3920_v37, %v2467_v38 }
0x2ca2   : > { %2471 = vrot.lane.b32.xlu1 %v2469_v39, %s3992_s21 }
0x2d14   : > { %v2472_v41 = vpop.permute.xlu1 %2471 }
0x2d15   : > { %v2474_v42 = vadd.f32 %v2472_v41, %v2464_v40  ;;  %v2802_v40 = vld [vmem:[#allocation6 + $0x8] sm:$0x3] }
0x2d17   : > { %3921 = vtanh.f32 %v2474_v42 }
0x2d24   : > { %v3922_v43 = vpop.eup %3921 }
0x2d25   : > { %2477 = vrot.lane.b32.xlu0 %v3922_v43, %s3990_s24 }
0x2d97   : > { %v2478_v44 = vpop.permute.xlu0 %2477 }
0x2d98   : > { %v2480_v45 = vmul.f32 %v3920_v37, %v2478_v44 }
0x2d9a   : > { %2482 = vrot.lane.b32.xlu1 %v2480_v45, %s3993_s22 }
0x2e0c   : > { %v2483_v46 = vpop.permute.xlu1 %2482 }
0x2e0d   : > { %2485 = vst.msk [vmem:[#allocation7] sm:$0x3] %vm1582_vm4, %v2483_v46  ;;  %3714 = vmatmul.mubr.msk.f32.vlgmr.msra.gmra.mxu0 %vm1480_vm5, %v2483_v46 }
0x2e0e   : > { %3724 = vmatpush3.msra.mxu0 %v4388_v17  ;;  %3727 = vmatprep.mubr.msk.f32.mxu0 %vm3988_vm0, %v3987_v2 }
0x2e0f   : > { %3725 = vmatprep.subr.mxu0 %v3987_v2 }
0x2e10   : > { %3726 = vmatpush3.msra.mxu0 %v4393_v18 }
0x2e11   : > { %3737 = vmatprep.subr.mxu0 %v3987_v2 }
0x2ecd   : > { %v2556_v50 = vpop.f32.mrf.mxu0 }
0x2ece   : > { %v2560_v51 = vadd.f32 %v2556_v50, %v2487_v49 }
0x2ecf   : > { %v3715_v52 = vpop.f32.mrf.mxu0 }
0x2ed0   : > { %3923 = vtanh.f32 %v2560_v51  ;;  %v3414_v54 = vmul.f32 -1.442695, %v2560_v51 }
0x2ed2   : > { %3925 = vpow2.f32 %v3414_v54 }
0x2edd   : > { %v3924_v53 = vpop.eup %3923 }
0x2ede   : > { %2570 = vrot.lane.b32.xlu0 %v3924_v53, %s3991_s20 }
0x2edf   : > { %v3926_v55 = vpop.eup %3925 }
0x2ee0   : > { %v2564_v56 = vadd.f32 1.0, %v3926_v55 }
0x2ee2   : > { %3927 = vrcp.f32 %v2564_v56 }
0x2eef   : > { %v3928_v57 = vpop.eup %3927 }
0x2ef0   : > { %v2568_v59 = vmul.f32 %v3928_v57, %v2474_v42 }
0x2f50   : > { %v2571_v4 = vpop.permute.xlu0 %2570 }
0x2f51   : > { %v2573_v58 = vmul.f32 %v3928_v57, %v2571_v4 }
0x2f53   : > { %2575 = vrot.lane.b32.xlu1 %v2573_v58, %s3992_s21 }
0x2fc5   : > { %v2576_v60 = vpop.permute.xlu1 %2575 }
0x2fc6   : > { %v2578_v5 = vadd.f32 %v2576_v60, %v2568_v59  ;;  %v2907_v59 = vld [vmem:[#allocation6 + $0xa] sm:$0x3] }
0x2fc8   : > { %3929 = vtanh.f32 %v2578_v5 }
0x2fd5   : > { %v3930_v61 = vpop.eup %3929 }
0x2fd6   : > { %2581 = vrot.lane.b32.xlu0 %v3930_v61, %s3990_s24 }
0x3048   : > { %v2582_v6 = vpop.permute.xlu0 %2581 }
0x3049   : > { %v2584_v62 = vmul.f32 %v3928_v57, %v2582_v6 }
0x304b   : > { %2586 = vrot.lane.b32.xlu1 %v2584_v62, %s3993_s22 }
0x30bd   : > { %v2587_v63 = vpop.permute.xlu1 %2586 }
0x30be   : > { %2590 = vst.msk [vmem:[#allocation7 + $0x2] sm:$0x3] %vm1582_vm4, %v2587_v63  ;;  %3721 = vmatmul.mubr.msk.f32.vlgmr.msra.gmra.mxu1 %vm1480_vm5, %v2587_v63 }
0x30bf   : > { %3731 = vmatpush3.msra.mxu1 %v4388_v17  ;;  %3734 = vmatprep.mubr.msk.f32.mxu1 %vm3988_vm0, %v3987_v2 }
0x30c0   : > { %3732 = vmatprep.subr.mxu1 %v3987_v2 }
0x30c1   : > { %3733 = vmatpush3.msra.mxu1 %v4393_v18 }
0x30c2   : > { %3744 = vmatprep.subr.mxu1 %v3987_v2 }
0x317e   : > { %v2661_v0 = vpop.f32.mrf.mxu1 }
0x317f   : > { %v2665_v1 = vadd.f32 %v2661_v0, %v2592_v7 }
0x3180   : > { %v3722_v3 = vpop.f32.mrf.mxu1 }
0x3181   : > { %3931 = vtanh.f32 %v2665_v1  ;;  %v3416_v9 = vmul.f32 -1.442695, %v2665_v1 }
0x3183   : > { %3933 = vpow2.f32 %v3416_v9 }
0x318e   : > { %v3932_v8 = vpop.eup %3931 }
0x318f   : > { %2675 = vrot.lane.b32.xlu0 %v3932_v8, %s3991_s20 }
0x3190   : > { %v3934_v10 = vpop.eup %3933 }
0x3191   : > { %v2669_v11 = vadd.f32 1.0, %v3934_v10 }
0x3193   : > { %3935 = vrcp.f32 %v2669_v11 }
0x31a0   : > { %v3936_v12 = vpop.eup %3935 }
0x31a1   : > { %v2673_v15 = vmul.f32 %v3936_v12, %v2578_v5 }
0x3201   : > { %v2676_v13 = vpop.permute.xlu0 %2675 }
0x3202   : > { %v2678_v14 = vmul.f32 %v3936_v12, %v2676_v13  ;;  %v3012_v13 = vld [vmem:[#allocation6 + $0xc] sm:$0x3] }
0x3204   : > { %2680 = vrot.lane.b32.xlu1 %v2678_v14, %s3992_s21 }
0x3276   : > { %v2681_v16 = vpop.permute.xlu1 %2680 }
0x3277   : > { %v2683_v19 = vadd.f32 %v2681_v16, %v2673_v15 }
0x3279   : > { %3937 = vtanh.f32 %v2683_v19 }
0x3286   : > { %v3938_v20 = vpop.eup %3937 }
0x3287   : > { %2686 = vrot.lane.b32.xlu0 %v3938_v20, %s3990_s24 }
0x32f9   : > { %v2687_v21 = vpop.permute.xlu0 %2686 }
0x32fa   : > { %v2689_v22 = vmul.f32 %v3936_v12, %v2687_v21 }
0x32fc   : > { %2691 = vrot.lane.b32.xlu1 %v2689_v22, %s3993_s22 }
0x336e   : > { %v2692_v23 = vpop.permute.xlu1 %2691 }
0x336f   : > { %2695 = vst.msk [vmem:[#allocation7 + $0x4] sm:$0x3] %vm1582_vm4, %v2692_v23  ;;  %3728 = vmatmul.mubr.msk.f32.vlgmr.msra.gmra.mxu0 %vm1480_vm5, %v2692_v23 }
0x3370   : > { %3738 = vmatpush3.msra.mxu0 %v4388_v17  ;;  %3741 = vmatprep.mubr.msk.f32.mxu0 %vm3988_vm0, %v3987_v2 }
0x3371   : > { %3739 = vmatprep.subr.mxu0 %v3987_v2 }
0x3372   : > { %3740 = vmatpush3.msra.mxu0 %v4393_v18 }
0x3373   : > { %3751 = vmatprep.subr.mxu0 %v3987_v2 }
0x342f   : > { %v2766_v25 = vpop.f32.mrf.mxu0 }
0x3430   : > { %v2770_v26 = vadd.f32 %v2766_v25, %v2697_v24 }
0x3431   : > { %v3729_v27 = vpop.f32.mrf.mxu0 }
0x3432   : > { %3939 = vtanh.f32 %v2770_v26  ;;  %v3418_v29 = vmul.f32 -1.442695, %v2770_v26 }
0x3434   : > { %3941 = vpow2.f32 %v3418_v29 }
0x343f   : > { %v3940_v28 = vpop.eup %3939 }
0x3440   : > { %2780 = vrot.lane.b32.xlu0 %v3940_v28, %s3991_s20 }
0x3441   : > { %v3942_v30 = vpop.eup %3941 }
0x3442   : > { %v2774_v31 = vadd.f32 1.0, %v3942_v30 }
0x3444   : > { %3943 = vrcp.f32 %v2774_v31 }
0x3451   : > { %v3944_v32 = vpop.eup %3943 }
0x3452   : > { %v2778_v34 = vmul.f32 %v3944_v32, %v2683_v19 }
0x34b2   : > { %v2781_v47 = vpop.permute.xlu0 %2780 }
0x34b3   : > { %v2783_v33 = vmul.f32 %v3944_v32, %v2781_v47  ;;  %v3117_v47 = vld [vmem:[#allocation6 + $0xe] sm:$0x3] }
0x34b5   : > { %2785 = vrot.lane.b32.xlu1 %v2783_v33, %s3992_s21 }
0x3527   : > { %v2786_v35 = vpop.permute.xlu1 %2785 }
0x3528   : > { %v2788_v36 = vadd.f32 %v2786_v35, %v2778_v34 }
0x352a   : > { %3945 = vtanh.f32 %v2788_v36 }
0x3537   : > { %v3946_v48 = vpop.eup %3945 }
0x3538   : > { %2791 = vrot.lane.b32.xlu0 %v3946_v48, %s3990_s24 }
0x35aa   : > { %v2792_v37 = vpop.permute.xlu0 %2791 }
0x35ab   : > { %v2794_v38 = vmul.f32 %v3944_v32, %v2792_v37 }
0x35ad   : > { %2796 = vrot.lane.b32.xlu1 %v2794_v38, %s3993_s22 }
0x361f   : > { %v2797_v39 = vpop.permute.xlu1 %2796 }
0x3620   : > { %2800 = vst.msk [vmem:[#allocation7 + $0x6] sm:$0x3] %vm1582_vm4, %v2797_v39  ;;  %3735 = vmatmul.mubr.msk.f32.vlgmr.msra.gmra.mxu1 %vm1480_vm5, %v2797_v39 }
0x3621   : > { %3745 = vmatpush3.msra.mxu1 %v4388_v17  ;;  %3748 = vmatprep.mubr.msk.f32.mxu1 %vm3988_vm0, %v3987_v2 }
0x3622   : > { %3746 = vmatprep.subr.mxu1 %v3987_v2 }
0x3623   : > { %3747 = vmatpush3.msra.mxu1 %v4393_v18 }
0x3624   : > { %3758 = vmatprep.subr.mxu1 %v3987_v2 }
0x36e0   : > { %v2871_v41 = vpop.f32.mrf.mxu1 }
0x36e1   : > { %v2875_v42 = vadd.f32 %v2871_v41, %v2802_v40 }
0x36e2   : > { %v3736_v43 = vpop.f32.mrf.mxu1 }
0x36e3   : > { %3947 = vtanh.f32 %v2875_v42  ;;  %v3420_v45 = vmul.f32 -1.442695, %v2875_v42 }
0x36e5   : > { %3949 = vpow2.f32 %v3420_v45 }
0x36f0   : > { %v3948_v44 = vpop.eup %3947 }
0x36f1   : > { %2885 = vrot.lane.b32.xlu0 %v3948_v44, %s3991_s20 }
0x36f2   : > { %v3950_v46 = vpop.eup %3949 }
0x36f3   : > { %v2879_v49 = vadd.f32 1.0, %v3950_v46 }
0x36f5   : > { %3951 = vrcp.f32 %v2879_v49 }
0x3702   : > { %v3952_v50 = vpop.eup %3951 }
0x3703   : > { %v2883_v53 = vmul.f32 %v3952_v50, %v2788_v36 }
0x3763   : > { %v2886_v51 = vpop.permute.xlu0 %2885 }
0x3764   : > { %v2888_v52 = vmul.f32 %v3952_v50, %v2886_v51  ;;  %v3994_v51 = vmov 0  }
0x3765   : > { %3781 = vset.pattern.permute.xlu0 %v3994_v51 }
0x3766   : > { %2890 = vrot.lane.b32.xlu1 %v2888_v52, %s3992_s21 }
0x37d8   : > { %v2891_v54 = vpop.permute.xlu1 %2890 }
0x37d9   : > { %v2893_v55 = vadd.f32 %v2891_v54, %v2883_v53  ;;  %v3222_v54 = vld [vmem:[#allocation7] sm:$0xff] }
0x37db   : > { %3953 = vtanh.f32 %v2893_v55 }
0x37e8   : > { %v3954_v56 = vpop.eup %3953 }
0x37e9   : > { %2896 = vrot.lane.b32.xlu0 %v3954_v56, %s3990_s24  ;;  %v3230_v56 = vlaneseq }
0x385b   : > { %v2897_v57 = vpop.permute.xlu0 %2896 }
0x385c   : > { %v2899_v4 = vmul.f32 %v3952_v50, %v2897_v57  ;;  %v3224_v50 = vld [vmem:[#allocation8] sm:$0x1]  ;;  %v3231_v57 = vshrl.u32 %v3230_v56, 7 }
0x385e   : > { %2901 = vrot.lane.b32.xlu1 %v2899_v4, %s3993_s22  ;;  %v3232_v4 = vsub.s32 0, %v3231_v57 }
0x38d0   : > { %v2902_v58 = vpop.permute.xlu1 %2901 }
0x38d1   : > { %2905 = vst.msk [vmem:[#allocation7 + $0x8] sm:$0x3] %vm1582_vm4, %v2902_v58  ;;  %3742 = vmatmul.mubr.msk.f32.vlgmr.msra.gmra.mxu0 %vm1480_vm5, %v2902_v58 }
0x38d2   : > { %3752 = vmatpush3.msra.mxu0 %v4388_v17  ;;  %3755 = vmatprep.mubr.msk.f32.mxu0 %vm3988_vm0, %v3987_v2 }
0x38d3   : > { %3753 = vmatprep.subr.mxu0 %v3987_v2 }
0x38d4   : > { %3754 = vmatpush3.msra.mxu0 %v4393_v18 }
0x3991   : > { %v2976_v60 = vpop.f32.mrf.mxu0 }
0x3992   : > { %v2980_v5 = vadd.f32 %v2976_v60, %v2907_v59 }
0x3993   : > { %v3743_v61 = vpop.f32.mrf.mxu0 }
0x3994   : > { %3955 = vtanh.f32 %v2980_v5  ;;  %v3422_v62 = vmul.f32 -1.442695, %v2980_v5 }
0x3996   : > { %3957 = vpow2.f32 %v3422_v62 }
0x39a1   : > { %v3956_v6 = vpop.eup %3955 }
0x39a2   : > { %2990 = vrot.lane.b32.xlu0 %v3956_v6, %s3991_s20 }
0x39a3   : > { %v3958_v63 = vpop.eup %3957 }
0x39a4   : > { %v2984_v7 = vadd.f32 1.0, %v3958_v63 }
0x39a6   : > { %3959 = vrcp.f32 %v2984_v7 }
0x39b3   : > { %v3960_v17 = vpop.eup %3959 }
0x39b4   : > { %v2988_v3 = vmul.f32 %v3960_v17, %v2893_v55  ;;  %v3221_v55 = vld [vmem:[%s4524_s12] sm:$0x1] }
0x3a14   : > { %v2991_v0 = vpop.permute.xlu0 %2990 }
0x3a15   : > { %v2993_v1 = vmul.f32 %v3960_v17, %v2991_v0 }
0x3a17   : > { %2995 = vrot.lane.b32.xlu1 %v2993_v1, %s3992_s21 }
0x3a89   : > { %v2996_v18 = vpop.permute.xlu1 %2995 }
0x3a8a   : > { %v2998_v8 = vadd.f32 %v2996_v18, %v2988_v3 }
0x3a8c   : > { %3961 = vtanh.f32 %v2998_v8 }
0x3a99   : > { %v3962_v9 = vpop.eup %3961 }
0x3a9a   : > { %3001 = vrot.lane.b32.xlu0 %v3962_v9, %s3990_s24 }
0x3b0c   : > { %v3002_v10 = vpop.permute.xlu0 %3001 }
0x3b0d   : > { %v3004_v11 = vmul.f32 %v3960_v17, %v3002_v10 }
0x3b0f   : > { %3006 = vrot.lane.b32.xlu1 %v3004_v11, %s3993_s22 }
0x3b81   : > { %v3007_v12 = vpop.permute.xlu1 %3006 }
0x3b82   : > { %3010 = vst.msk [vmem:[#allocation7 + $0xa] sm:$0x3] %vm1582_vm4, %v3007_v12  ;;  %3749 = vmatmul.mubr.msk.f32.vlgmr.msra.gmra.mxu1 %vm1480_vm5, %v3007_v12 }
0x3b83   : > { %3762 = vmatprep.mubr.msk.f32.mxu1 %vm3988_vm0, %v3987_v2 }
0x3c42   : > { %v3081_v14 = vpop.f32.mrf.mxu1 }
0x3c43   : > { %v3085_v15 = vadd.f32 %v3081_v14, %v3012_v13 }
0x3c44   : > { %v3750_v16 = vpop.f32.mrf.mxu1 }
0x3c45   : > { %3963 = vtanh.f32 %v3085_v15  ;;  %v3424_v20 = vmul.f32 -1.442695, %v3085_v15 }
0x3c47   : > { %3965 = vpow2.f32 %v3424_v20 }
0x3c52   : > { %v3964_v19 = vpop.eup %3963 }
0x3c53   : > { %3095 = vrot.lane.b32.xlu0 %v3964_v19, %s3991_s20 }
0x3c54   : > { %v3966_v21 = vpop.eup %3965 }
0x3c55   : > { %v3089_v22 = vadd.f32 1.0, %v3966_v21 }
0x3c57   : > { %3967 = vrcp.f32 %v3089_v22 }
0x3c64   : > { %v3968_v23 = vpop.eup %3967 }
0x3c65   : > { %v3093_v26 = vmul.f32 %v3968_v23, %v2998_v8 }
0x3cc5   : > { %v3096_v24 = vpop.permute.xlu0 %3095 }
0x3cc6   : > { %v3098_v25 = vmul.f32 %v3968_v23, %v3096_v24 }
0x3cc8   : > { %3100 = vrot.lane.b32.xlu1 %v3098_v25, %s3992_s21 }
0x3d3a   : > { %v3101_v27 = vpop.permute.xlu1 %3100 }
0x3d3b   : > { %v3103_v28 = vadd.f32 %v3101_v27, %v3093_v26 }
0x3d3d   : > { %3969 = vtanh.f32 %v3103_v28 }
0x3d4a   : > { %v3970_v29 = vpop.eup %3969 }
0x3d4b   : > { %3106 = vrot.lane.b32.xlu0 %v3970_v29, %s3990_s24 }
0x3dbd   : > { %v3107_v30 = vpop.permute.xlu0 %3106 }
0x3dbe   : > { %v3109_v31 = vmul.f32 %v3968_v23, %v3107_v30 }
0x3dc0   : > { %3111 = vrot.lane.b32.xlu1 %v3109_v31, %s3993_s22 }
0x3e32   : > { %v3112_v32 = vpop.permute.xlu1 %3111 }
0x3e33   : > { %3115 = vst.msk [vmem:[#allocation7 + $0xc] sm:$0x3] %vm1582_vm4, %v3112_v32  ;;  %3756 = vmatmul.mubr.msk.f32.vlgmr.msra.gmra.mxu0 %vm1480_vm5, %v3112_v32 }
0x3ef3   : > { %v3186_v33 = vpop.f32.mrf.mxu0 }
0x3ef4   : > { %v3190_v34 = vadd.f32 %v3186_v33, %v3117_v47 }
0x3ef5   : > { %v3757_v35 = vpop.f32.mrf.mxu0 }
0x3ef6   : > { %3971 = vtanh.f32 %v3190_v34  ;;  %v3426_v48 = vmul.f32 -1.442695, %v3190_v34 }
0x3ef8   : > { %3973 = vpow2.f32 %v3426_v48 }
0x3f03   : > { %v3972_v36 = vpop.eup %3971 }
0x3f04   : > { %3200 = vrot.lane.b32.xlu0 %v3972_v36, %s3991_s20  ;;  %s465_s20 = scalar_lea.vmem %s4526_s14, %s4528_s16 }
0x3f05   : > { %v3974_v37 = vpop.eup %3973 }
0x3f06   : > { %v3194_v38 = vadd.f32 1.0, %v3974_v37 }
0x3f08   : > { %3975 = vrcp.f32 %v3194_v38 }
0x3f15   : > { %v3976_v39 = vpop.eup %3975 }
0x3f16   : > { %v3198_v42 = vmul.f32 %v3976_v39, %v3103_v28 }
0x3f76   : > { %v3201_v40 = vpop.permute.xlu0 %3200 }
0x3f77   : > { %v3203_v41 = vmul.f32 %v3976_v39, %v3201_v40 }
0x3f79   : > { %3205 = vrot.lane.b32.xlu1 %v3203_v41, %s3992_s21 }
0x3feb   : > { %v3206_v43 = vpop.permute.xlu1 %3205 }
0x3fec   : > { %v3208_v44 = vadd.f32 %v3206_v43, %v3198_v42 }
0x3fee   : > { %3977 = vtanh.f32 %v3208_v44 }
0x3ffb   : > { %v3978_v45 = vpop.eup %3977 }
0x3ffc   : > { %3211 = vrot.lane.b32.xlu0 %v3978_v45, %s3990_s24 }
0x4000   : > { %3227 = vperm.xlu0 %3781, %v3224_v50  }
0x406e   : > { %v3212_v46 = vpop.permute.xlu0 %3211 }
0x406f   : > { %v3214_v49 = vmul.f32 %v3976_v39, %v3212_v46 }
0x4071   : > { %3216 = vrot.lane.b32.xlu1 %v3214_v49, %s3993_s22 }
0x407b   : > { %v3228_v58 = vpop.permute.xlu0 %3227 }
0x407c   : > { %v3233_v59 = vrot.slane %v3228_v58, %v3232_v4 }
0x40e3   : > { %v3217_v52 = vpop.permute.xlu1 %3216 }
0x40e4   : > { %3220 = vst.msk [vmem:[#allocation7 + $0xe] sm:$0x3] %vm1582_vm4, %v3217_v52 }
0x40eb   : > { %v3223_v53 = vld [vmem:[#allocation7 + $0x8] sm:$0xff] }
0x40ec   : > { %3759 = vmatpush3.xpose.msk.msra.mxu1 %vm1480_vm5, %v3223_v53 }
0x40ed   : > { %3760 = vmatprep.subr.mxu1 %v3987_v2 }
0x40f0   : > { %3761 = vmatpush3.xpose.msk.msra.mxu1 %vm1480_vm5, %v3222_v54 }
0x40f3   : > { %3763 = vmatmul.mubr.msk.f32.vlgmr.msra.gmra.mxu1 %vm1480_vm5, %v3221_v55 }
0x41b3   : > { %v3309_v60 = vpop.f32.mrf.mxu1 }
0x41b4   : > { %v3310_v2 = vadd.f32 %v3309_v60, %v3233_v59 }
0x41b5   : > { %v3764_v5 = vpop.f32.mrf.mxu1 }
0x41b6   : > { %3314 = vst.msk [vmem:[%s465_s20] sm:$0x1] %vm3313_vm6, %v3310_v2 }
0x41b7 PF: > { %s26_s15 = sadd.s32 1, %s3985_s15  }
0x41b8   : > { %p23_p4 = scmp.ge.s32.totalorder %s26_s15, 4  }
0x41ba   :  { %25 = sbr.rel (!%p23_p4) target bundleno = 3 (0x3), region = 148 }

</bundles_post_ra>
